<compile_context>
chip_gen: v7x
topology: tpu7x:2x2x1
jax: 0.10.0
libtpu: 0.0.40
codegen_flags: <defaults>
</compile_context>

<pallas_src>
import functools
from types import SimpleNamespace

import jax
import jax.numpy as jnp
import numpy as np
from jax.experimental import pallas as pl
from jax.experimental.pallas import tpu as pltpu


def _round_up(x, m):
    return ((x + m - 1) // m) * m


# ----------------------------------------------------------------------------
# Fused Pallas kernel: both bidirectional clipped GRUs + IC head
# ----------------------------------------------------------------------------
def _encoder_fused_kernel(x_ref, h0_ref, wi_ref, bi_ref, wh_ref, bhn_ref,
                          whead_ref, bhead_ref, head_ref, *ci_refs,
                          clip_value, var_min, hidden, batch_tile, seq_len,
                          ic_dim, emit_ci):
    """All chains lane-packed; one batch tile per grid step.

    x_ref:     (T*bb, 2D)      row = s*bb + b; cols [:D]=x[s], [D:]=x[T-1-s]
    h0_ref:    (1, NCH)        packed initial hidden (chain-major lanes)
    wi_ref:    (2D, 3*NCH)     fused per-gate input weights; fwd chains read
                               rows [:D], bwd chains rows [D:2D] (zeros else)
    bi_ref:    (1, 3*NCH)      b_ih (+ b_hh folded in for r, z gates)
    wh_ref:    (NCH, 3*NCH)    per-gate block-diagonal hidden weights, gates
                               stacked along output lanes (r | z | n)
    bhn_ref:   (1, NCH)        b_hh of the n gate (multiplied by r)
    whead_ref: (NCH, HPAD)     zero-padded ic_linear (rows >= 2H are zero)
    bhead_ref: (1, HPAD)
    head_ref:  (bb, HPAD)      lanes [:IC]=mean, [IC:2IC]=std, rest padding
    ci_refs:   [(T, bb, NCH)]  full packed hidden per step (if emit_ci)
    """
    T = seq_len
    bb = batch_tile
    NCH = h0_ref.shape[-1]

    # ---- hoisted, off the serial path: one fused input projection ----------
    gi = jnp.dot(x_ref[...], wi_ref[...],
                 preferred_element_type=jnp.float32) + bi_ref[...]   # (T*bb, 3*NCH)
    gi_r = gi[:, :NCH]
    gi_z = gi[:, NCH:2 * NCH]
    gi_n = gi[:, 2 * NCH:]

    wh_all = wh_ref[...]                  # (NCH, 3*NCH)
    b_hn = bhn_ref[...]                   # (1, NCH)

    h = jnp.broadcast_to(h0_ref[...], (bb, NCH))

    if emit_ci:
        (hseq_ref,) = ci_refs

    # ---- fully unrolled serial recurrence: one MXU matmul per step ---------
    for s in range(T):
        rows = slice(s * bb, (s + 1) * bb)        # sublane-aligned (bb % 8 == 0)
        gh = jnp.dot(h, wh_all, preferred_element_type=jnp.float32)  # (bb, 3*NCH)
        r = jax.nn.sigmoid(gi_r[rows] + gh[:, :NCH])
        z = jax.nn.sigmoid(gi_z[rows] + gh[:, NCH:2 * NCH])
        n = jnp.tanh(gi_n[rows] + r * (gh[:, 2 * NCH:] + b_hn))
        h = jnp.clip((1.0 - z) * n + z * h, -clip_value, clip_value)
        if emit_ci:
            hseq_ref[s] = h                       # lane-dense 128-wide store

    # ---- fused IC head: one matmul, one unmasked 128-lane store ------------
    head = jnp.dot(h, whead_ref[...],
                   preferred_element_type=jnp.float32) + bhead_ref[...]
    lane = jax.lax.broadcasted_iota(jnp.int32, head.shape, 1)
    is_std = jnp.logical_and(lane >= ic_dim, lane < 2 * ic_dim)
    head_ref[...] = jnp.where(is_std, jnp.sqrt(jnp.exp(head) + var_min), head)


# ----------------------------------------------------------------------------
# Host-side parameter packing (tiny weight reshuffles, fused by XLA)
# ----------------------------------------------------------------------------
def _pack_gru_gate_weights(enc_params_list, H, D):
    """Pack one or two bidirectional GRUs into the fused lane-packed layout."""
    chains = []
    for p in enc_params_list:
        for d in range(2):  # forward, backward direction
            chains.append(dict(wih=p["wih"][d], whh=p["whh"][d],
                               bih=p["bih"][d], bhh=p["bhh"][d]))
    nc = len(chains)
    NCH = nc * H
    wi = jnp.zeros((2 * D, 3 * NCH), jnp.float32)
    bi = jnp.zeros((1, 3 * NCH), jnp.float32)
    wh = jnp.zeros((NCH, 3 * NCH), jnp.float32)
    bhn = jnp.zeros((1, NCH), jnp.float32)
    for g in range(3):                       # gate order r, z, n
        gsl = slice(g * H, (g + 1) * H)      # slice into per-chain (., 3H) params
        for c, ch in enumerate(chains):
            col = slice(g * NCH + c * H, g * NCH + (c + 1) * H)
            # fwd chains (even c) read x[s] rows [:D]; bwd chains rows [D:2D]
            row = slice(0, D) if c % 2 == 0 else slice(D, 2 * D)
            wi = wi.at[row, col].set(ch["wih"][:, gsl])
            if g < 2:   # fold b_hh into the input-side bias for r, z
                bi = bi.at[:, col].set(ch["bih"][:, gsl] + ch["bhh"][:, gsl])
            else:
                bi = bi.at[:, col].set(ch["bih"][:, gsl])
            wh = wh.at[c * H:(c + 1) * H, col].set(ch["whh"][:, gsl])
            if g == 2:
                bhn = bhn.at[:, c * H:(c + 1) * H].set(ch["bhh"][:, gsl])
    return wi, bi, wh, bhn


def _pack_ic_head(w, b, H, ic_dim, nch, head_pad):
    """Zero-pad ic_linear so it applies directly to the packed final state."""
    whead = jnp.zeros((nch, head_pad), jnp.float32)
    whead = whead.at[:2 * H, :2 * ic_dim].set(w[:, :2 * ic_dim])
    bhead = jnp.zeros((1, head_pad), jnp.float32)
    bhead = bhead.at[:, :2 * ic_dim].set(b[:, :2 * ic_dim])
    return whead, bhead


# ----------------------------------------------------------------------------
# Encoder forward (single pallas_call + tiny JAX glue for the ci shift/pad)
# ----------------------------------------------------------------------------
def encoder_forward(params, data, cfg):
    """data: (batch, ENCOD_SEQ_LEN, ENCOD_DATA_DIM), float32."""
    m = cfg.MODEL
    B, T, D = data.shape
    assert T == m.ENCOD_SEQ_LEN, "sequence length mismatch with config"
    H = m.IC_ENC_DIM

    use_con = all([m.CI_ENC_DIM > 0, m.CON_DIM > 0, m.CO_DIM > 0])
    if use_con:
        assert m.CI_ENC_DIM == m.IC_ENC_DIM, "fused kernel packs equal-width chains"
        enc_list = [params["ic_enc"], params["ci_enc"]]
        h0 = jnp.concatenate(
            [params["ic_enc_h0"][0], params["ic_enc_h0"][1],
             params["ci_enc_h0"][0], params["ci_enc_h0"][1]], axis=1)
    else:
        enc_list = [params["ic_enc"]]
        h0 = jnp.concatenate(
            [params["ic_enc_h0"][0], params["ic_enc_h0"][1]], axis=1)
    NCH = h0.shape[-1]
    head_pad = max(128, _round_up(2 * int(m.IC_DIM), 128))

    # batch tiling: pad to a multiple of 8 sublanes; tile <= 256 rows keeps
    # buffers well under v7x's 64 MiB VMEM; "parallel" grid uses both v7x TCs.
    bb = min(256, _round_up(B, 8))
    B_pad = _round_up(B, bb)
    n_bt = B_pad // bb

    wi, bi, wh, bhn = _pack_gru_gate_weights(enc_list, H, D)
    whead, bhead = _pack_ic_head(
        params["ic_linear_w"], params["ic_linear_b"], H, int(m.IC_DIM),
        NCH, head_pad)

    # TODO(synk): nn.Dropout is identity in eval mode; training-mode random
    # masking (on data and on h_n before ic_linear) is not applied here.
    x_tm = jnp.transpose(data, (1, 0, 2))                       # (T, B, D)
    x2 = jnp.concatenate([x_tm, x_tm[::-1]], axis=-1)           # (T, B, 2D)
    x2 = jnp.pad(x2, ((0, 0), (0, B_pad - B), (0, 0)))
    # batch-tile-major flat rows: row = tile*(T*bb) + s*bb + local_b
    x2 = (x2.reshape(T, n_bt, bb, 2 * D)
             .transpose(1, 0, 2, 3)
             .reshape(n_bt * T * bb, 2 * D))

    kern = functools.partial(
        _encoder_fused_kernel,
        clip_value=float(cfg.CELL_CLIP), var_min=float(cfg.IC_POST_VAR_MIN),
        hidden=H, batch_tile=bb, seq_len=T, ic_dim=int(m.IC_DIM),
        emit_ci=use_con)

    in_specs = [
        pl.BlockSpec((T * bb, 2 * D), lambda i: (i, 0)),        # x2 batch tile
        pl.BlockSpec((1, NCH), lambda i: (0, 0)),               # h0
        pl.BlockSpec((2 * D, 3 * NCH), lambda i: (0, 0)),       # wi
        pl.BlockSpec((1, 3 * NCH), lambda i: (0, 0)),           # bi
        pl.BlockSpec((NCH, 3 * NCH), lambda i: (0, 0)),         # wh
        pl.BlockSpec((1, NCH), lambda i: (0, 0)),               # bhn
        pl.BlockSpec((NCH, head_pad), lambda i: (0, 0)),        # whead
        pl.BlockSpec((1, head_pad), lambda i: (0, 0)),          # bhead
    ]
    out_shapes = [jax.ShapeDtypeStruct((B_pad, head_pad), jnp.float32)]
    out_specs = [pl.BlockSpec((bb, head_pad), lambda i: (i, 0))]
    if use_con:
        out_shapes.append(jax.ShapeDtypeStruct((T, B_pad, NCH), jnp.float32))
        out_specs.append(pl.BlockSpec((T, bb, NCH), lambda i: (0, i, 0)))

    outs = pl.pallas_call(
        kern,
        grid=(n_bt,),
        out_shape=tuple(out_shapes),
        in_specs=in_specs,
        out_specs=tuple(out_specs),
        compiler_params=pltpu.CompilerParams(
            dimension_semantics=("parallel",)),
    )(x2, h0, wi, bi, wh, bhn, whead, bhead)

    head = outs[0]
    ic_mean = head[:B, :m.IC_DIM]
    ic_std = head[:B, m.IC_DIM:2 * m.IC_DIM]

    if use_con:
        hseq = outs[1]                                           # (T, B_pad, NCH)
        # ci chains live in lanes [2H:3H] (fwd) and [3H:4H] (bwd); bwd chain at
        # step s processed input time T-1-s, so reverse time for ci_bwd.
        ci_fwd = jnp.transpose(hseq[:, :B, 2 * H:3 * H], (1, 0, 2))      # (B,T,H)
        ci_bwd = jnp.transpose(hseq[::-1, :B, 3 * H:4 * H], (1, 0, 2))   # (B,T,H)
        ci_fwd = jnp.pad(ci_fwd, ((0, 0), (m.CI_LAG, 0), (0, 0)))
        ci_bwd = jnp.pad(ci_bwd, ((0, 0), (0, m.CI_LAG), (0, 0)))
        ci_len = m.ENCOD_SEQ_LEN - m.IC_ENC_SEQ_LEN
        ci = jnp.concatenate(
            [ci_fwd[:, :ci_len, :], ci_bwd[:, -ci_len:, :]], axis=2)
        fwd_steps = m.RECON_SEQ_LEN - m.ENCOD_SEQ_LEN
        ci = jnp.pad(ci, ((0, 0), (0, fwd_steps), (0, 0)))
        ci = jnp.pad(ci, ((0, 0), (m.IC_ENC_SEQ_LEN, 0), (0, 0)))
    else:
        ci = jnp.zeros((B, m.RECON_SEQ_LEN, 0), jnp.float32)

    return ic_mean, ic_std, ci


# ----------------------------------------------------------------------------
# Pure-JAX reference (mirrors the PyTorch module) for a value check
# ----------------------------------------------------------------------------
def _ref_gru_cell(x_t, h, wih, whh, bih, bhh, clip_value, H):
    hp = jax.lax.Precision.HIGHEST
    gi = jnp.dot(x_t, wih, precision=hp) + bih
    gh = jnp.dot(h, whh, precision=hp) + bhh
    r = jax.nn.sigmoid(gi[:, :H] + gh[:, :H])
    z = jax.nn.sigmoid(gi[:, H:2 * H] + gh[:, H:2 * H])
    n = jnp.tanh(gi[:, 2 * H:] + r * gh[:, 2 * H:])
    return jnp.clip((1.0 - z) * n + z * h, -clip_value, clip_value)


def _ref_bigru(x_btd, h0, p, clip_value):
    B, T, _ = x_btd.shape
    H = h0.shape[-1]
    hs_f, hs_b = [], [None] * T
    h = jnp.broadcast_to(h0[0], (B, H))
    for t in range(T):
        h = _ref_gru_cell(x_btd[:, t], h, p["wih"][0], p["whh"][0],
                          p["bih"][0], p["bhh"][0], clip_value, H)
        hs_f.append(h)
    h_f = h
    h = jnp.broadcast_to(h0[1], (B, H))
    for t in reversed(range(T)):
        h = _ref_gru_cell(x_btd[:, t], h, p["wih"][1], p["whh"][1],
                          p["bih"][1], p["bhh"][1], clip_value, H)
        hs_b[t] = h
    h_b = h
    out = jnp.concatenate([jnp.stack(hs_f, 1), jnp.stack(hs_b, 1)], axis=2)
    return out, jnp.stack([h_f, h_b], 0)


def encoder_forward_ref(params, data, cfg):
    m = cfg.MODEL
    B = data.shape[0]
    hp = jax.lax.Precision.HIGHEST
    _, h_n = _ref_bigru(data, params["ic_enc_h0"], params["ic_enc"], cfg.CELL_CLIP)
    h_cat = jnp.concatenate([h_n[0], h_n[1]], axis=1)
    ic_params = jnp.dot(h_cat, params["ic_linear_w"], precision=hp) + params["ic_linear_b"]
    ic_mean = ic_params[:, :m.IC_DIM]
    ic_std = jnp.sqrt(jnp.exp(ic_params[:, m.IC_DIM:2 * m.IC_DIM]) + cfg.IC_POST_VAR_MIN)
    use_con = all([m.CI_ENC_DIM > 0, m.CON_DIM > 0, m.CO_DIM > 0])
    if use_con:
        ci_out, _ = _ref_bigru(data, params["ci_enc_h0"], params["ci_enc"], cfg.CELL_CLIP)
        ci_fwd, ci_bwd = ci_out[:, :, :m.IC_ENC_DIM], ci_out[:, :, m.IC_ENC_DIM:]
        ci_fwd = jnp.pad(ci_fwd, ((0, 0), (m.CI_LAG, 0), (0, 0)))
        ci_bwd = jnp.pad(ci_bwd, ((0, 0), (0, m.CI_LAG), (0, 0)))
        ci_len = m.ENCOD_SEQ_LEN - m.IC_ENC_SEQ_LEN
        ci = jnp.concatenate([ci_fwd[:, :ci_len, :], ci_bwd[:, -ci_len:, :]], axis=2)
        fwd_steps = m.RECON_SEQ_LEN - m.ENCOD_SEQ_LEN
        ci = jnp.pad(ci, ((0, 0), (0, fwd_steps), (0, 0)))
        ci = jnp.pad(ci, ((0, 0), (m.IC_ENC_SEQ_LEN, 0), (0, 0)))
    else:
        ci = jnp.zeros((B, m.RECON_SEQ_LEN, 0), jnp.float32)
    return ic_mean, ic_std, ci


# ----------------------------------------------------------------------------
# Config / params
# ----------------------------------------------------------------------------
def make_config():
    model = SimpleNamespace(
        ENCOD_DATA_DIM=16,
        ENCOD_SEQ_LEN=8,
        RECON_SEQ_LEN=10,
        IC_ENC_SEQ_LEN=2,
        IC_ENC_DIM=32,
        IC_DIM=32,
        CI_ENC_DIM=32,
        CON_DIM=16,
        CO_DIM=4,
        CI_LAG=1,
    )
    return SimpleNamespace(MODEL=model, CELL_CLIP=5.0,
                           IC_POST_VAR_MIN=1e-4, DROPOUT_RATE=0.0)


def _gru_params(key, d_in, h):
    ks = jax.random.split(key, 4)
    scale = 0.1
    return dict(
        wih=scale * jax.random.normal(ks[0], (2, d_in, 3 * h), jnp.float32),
        whh=scale * jax.random.normal(ks[1], (2, h, 3 * h), jnp.float32),
        bih=scale * jax.random.normal(ks[2], (2, 1, 3 * h), jnp.float32),
        bhh=scale * jax.random.normal(ks[3], (2, 1, 3 * h), jnp.float32))


def init_encoder_params(key, cfg):
    m = cfg.MODEL
    k1, k2, k3, k4, k5, k6 = jax.random.split(key, 6)
    # Reference init for the h0 parameters is zeros; use small random values
    # here to exercise the h0 path (they are learnable in the module anyway).
    return {
        "ic_enc_h0": 0.05 * jax.random.normal(k5, (2, 1, m.IC_ENC_DIM), jnp.float32),
        "ci_enc_h0": 0.05 * jax.random.normal(k6, (2, 1, m.CI_ENC_DIM), jnp.float32),
        "ic_enc": _gru_params(k1, m.ENCOD_DATA_DIM, m.IC_ENC_DIM),
        "ci_enc": _gru_params(k2, m.ENCOD_DATA_DIM, m.CI_ENC_DIM),
        "ic_linear_w": 0.1 * jax.random.normal(
            k3, (2 * m.IC_ENC_DIM, 2 * m.IC_ENC_DIM), jnp.float32),
        "ic_linear_b": 0.1 * jax.random.normal(
            k4, (1, 2 * m.IC_ENC_DIM), jnp.float32),
    }


# ----------------------------------------------------------------------------
# Demo
# ----------------------------------------------------------------------------
if __name__ == "__main__":
    cfg = make_config()
    m = cfg.MODEL

    key = jax.random.PRNGKey(0)
    k_data, k_params = jax.random.split(key)
    batch = 2
    data = jax.random.normal(
        k_data, (batch, m.ENCOD_SEQ_LEN, m.ENCOD_DATA_DIM), jnp.float32)
    params = init_encoder_params(k_params, cfg)

    fwd = jax.jit(functools.partial(encoder_forward, cfg=cfg))
    ic_mean, ic_std, ci = fwd(params, data)
    jax.block_until_ready((ic_mean, ic_std, ci))

    # value check against the pure-JAX reference of the PyTorch module
    ref_mean, ref_std, ref_ci = encoder_forward_ref(params, data, cfg)
    np.testing.assert_allclose(np.asarray(ic_mean), np.asarray(ref_mean),
                               rtol=1e-3, atol=1e-3)
    np.testing.assert_allclose(np.asarray(ic_std), np.asarray(ref_std),
                               rtol=1e-3, atol=1e-3)
    np.testing.assert_allclose(np.asarray(ci), np.asarray(ref_ci),
                               rtol=1e-3, atol=1e-3)

    assert ic_mean.shape == (batch, m.IC_DIM)
    assert ic_std.shape == (batch, m.IC_DIM)
    assert ci.shape == (batch, m.RECON_SEQ_LEN, 2 * m.CI_ENC_DIM)
    assert bool(jnp.all(ic_std > 0))

    print("KERNEL_OK")
</pallas_src>

<mosaic_0001>
module attributes {stable_mosaic.version = 11 : i64} {
  func.func @_encoder_fused_kernel(%arg0: i32, %arg1: memref<64x32xf32, #tpu.memory_space<vmem>>, %arg2: memref<1x128xf32, #tpu.memory_space<vmem>>, %arg3: memref<32x384xf32, #tpu.memory_space<vmem>>, %arg4: memref<1x384xf32, #tpu.memory_space<vmem>>, %arg5: memref<128x384xf32, #tpu.memory_space<vmem>>, %arg6: memref<1x128xf32, #tpu.memory_space<vmem>>, %arg7: memref<128x128xf32, #tpu.memory_space<vmem>>, %arg8: memref<1x128xf32, #tpu.memory_space<vmem>>, %arg9: memref<8x128xf32, #tpu.memory_space<vmem>>, %arg10: memref<8x8x128xf32, #tpu.memory_space<vmem>>) attributes {dimension_semantics = [#tpu.dimension_semantics<parallel>], iteration_bounds = array<i64: 1>, scalar_prefetch = 0 : i64, scratch_operands = 0 : i64, tpu.core_type = #tpu.core_type<tc>, window_params = [{transform_indices = @transform_0, window_bounds = array<i64: 64, 32>}, {pipeline_mode = #tpu.pipeline_mode<synchronous>, transform_indices = @transform_1, window_bounds = array<i64: 1, 128>}, {pipeline_mode = #tpu.pipeline_mode<synchronous>, transform_indices = @transform_2, window_bounds = array<i64: 32, 384>}, {pipeline_mode = #tpu.pipeline_mode<synchronous>, transform_indices = @transform_3, window_bounds = array<i64: 1, 384>}, {pipeline_mode = #tpu.pipeline_mode<synchronous>, transform_indices = @transform_4, window_bounds = array<i64: 128, 384>}, {pipeline_mode = #tpu.pipeline_mode<synchronous>, transform_indices = @transform_5, window_bounds = array<i64: 1, 128>}, {pipeline_mode = #tpu.pipeline_mode<synchronous>, transform_indices = @transform_6, window_bounds = array<i64: 128, 128>}, {pipeline_mode = #tpu.pipeline_mode<synchronous>, transform_indices = @transform_7, window_bounds = array<i64: 1, 128>}, {transform_indices = @transform_8, window_bounds = array<i64: 8, 128>}, {transform_indices = @transform_9, window_bounds = array<i64: 8, 8, 128>}]} {
    %c0 = arith.constant 0 : index
    %c0_0 = arith.constant 0 : index
    %0 = vector.load %arg1[%c0, %c0_0] : memref<64x32xf32, #tpu.memory_space<vmem>>, vector<64x32xf32>
    %c0_1 = arith.constant 0 : index
    %c0_2 = arith.constant 0 : index
    %1 = vector.load %arg3[%c0_1, %c0_2] : memref<32x384xf32, #tpu.memory_space<vmem>>, vector<32x384xf32>
    %cst = arith.constant dense<0.000000e+00> : vector<64x384xf32>
    %2 = tpu.matmul %0, %1, %cst {dimension_numbers = #tpu.dot_dimension_numbers<[1], [0], [0], [1], [0, 0, 1, 1], [], []>} : vector<64x32xf32>, vector<32x384xf32>, vector<64x384xf32> -> vector<64x384xf32>
    %c0_3 = arith.constant 0 : index
    %c0_4 = arith.constant 0 : index
    %3 = vector.load %arg4[%c0_3, %c0_4] : memref<1x384xf32, #tpu.memory_space<vmem>>, vector<1x384xf32>
    %4 = vector.broadcast %3 : vector<1x384xf32> to vector<64x384xf32>
    %5 = arith.addf %2, %4 : vector<64x384xf32>
    %6 = vector.extract_strided_slice %5 {offsets = [0, 0], sizes = [64, 128], strides = [1, 1]} : vector<64x384xf32> to vector<64x128xf32>
    %7 = vector.extract_strided_slice %5 {offsets = [0, 128], sizes = [64, 128], strides = [1, 1]} : vector<64x384xf32> to vector<64x128xf32>
    %8 = vector.extract_strided_slice %5 {offsets = [0, 256], sizes = [64, 128], strides = [1, 1]} : vector<64x384xf32> to vector<64x128xf32>
    %c0_5 = arith.constant 0 : index
    %c0_6 = arith.constant 0 : index
    %9 = vector.load %arg5[%c0_5, %c0_6] : memref<128x384xf32, #tpu.memory_space<vmem>>, vector<128x384xf32>
    %c0_7 = arith.constant 0 : index
    %c0_8 = arith.constant 0 : index
    %10 = vector.load %arg6[%c0_7, %c0_8] : memref<1x128xf32, #tpu.memory_space<vmem>>, vector<1x128xf32>
    %c0_9 = arith.constant 0 : index
    %c0_10 = arith.constant 0 : index
    %11 = vector.load %arg2[%c0_9, %c0_10] : memref<1x128xf32, #tpu.memory_space<vmem>>, vector<1x128xf32>
    %12 = vector.shape_cast %11 : vector<1x128xf32> to vector<1x128xf32>
    %13 = vector.broadcast %12 : vector<1x128xf32> to vector<8x128xf32>
    %cst_11 = arith.constant dense<0.000000e+00> : vector<8x384xf32>
    %14 = tpu.matmul %13, %9, %cst_11 {dimension_numbers = #tpu.dot_dimension_numbers<[1], [0], [0], [1], [0, 0, 1, 1], [], []>} : vector<8x128xf32>, vector<128x384xf32>, vector<8x384xf32> -> vector<8x384xf32>
    %15 = vector.extract_strided_slice %6 {offsets = [0, 0], sizes = [8, 128], strides = [1, 1]} : vector<64x128xf32> to vector<8x128xf32>
    %16 = vector.extract_strided_slice %14 {offsets = [0, 0], sizes = [8, 128], strides = [1, 1]} : vector<8x384xf32> to vector<8x128xf32>
    %17 = arith.addf %15, %16 : vector<8x128xf32>
    %18 = arith.negf %17 : vector<8x128xf32>
    %19 = math.exp %18 : vector<8x128xf32>
    %cst_12 = arith.constant 1.000000e+00 : f32
    %20 = vector.broadcast %cst_12 : f32 to vector<8x128xf32>
    %21 = arith.addf %20, %19 : vector<8x128xf32>
    %22 = arith.divf %20, %21 : vector<8x128xf32>
    %23 = vector.extract_strided_slice %7 {offsets = [0, 0], sizes = [8, 128], strides = [1, 1]} : vector<64x128xf32> to vector<8x128xf32>
    %24 = vector.extract_strided_slice %14 {offsets = [0, 128], sizes = [8, 128], strides = [1, 1]} : vector<8x384xf32> to vector<8x128xf32>
    %25 = arith.addf %23, %24 : vector<8x128xf32>
    %26 = arith.negf %25 : vector<8x128xf32>
    %27 = math.exp %26 : vector<8x128xf32>
    %cst_13 = arith.constant 1.000000e+00 : f32
    %28 = vector.broadcast %cst_13 : f32 to vector<8x128xf32>
    %29 = arith.addf %28, %27 : vector<8x128xf32>
    %30 = arith.divf %28, %29 : vector<8x128xf32>
    %31 = vector.extract_strided_slice %8 {offsets = [0, 0], sizes = [8, 128], strides = [1, 1]} : vector<64x128xf32> to vector<8x128xf32>
    %32 = vector.extract_strided_slice %14 {offsets = [0, 256], sizes = [8, 128], strides = [1, 1]} : vector<8x384xf32> to vector<8x128xf32>
    %33 = vector.broadcast %10 : vector<1x128xf32> to vector<8x128xf32>
    %34 = arith.addf %32, %33 : vector<8x128xf32>
    %35 = arith.mulf %22, %34 : vector<8x128xf32>
    %36 = arith.addf %31, %35 : vector<8x128xf32>
    %37 = math.tanh %36 : vector<8x128xf32>
    %cst_14 = arith.constant 1.000000e+00 : f32
    %38 = vector.broadcast %cst_14 : f32 to vector<8x128xf32>
    %39 = arith.subf %38, %30 : vector<8x128xf32>
    %40 = arith.mulf %39, %37 : vector<8x128xf32>
    %41 = arith.mulf %30, %13 : vector<8x128xf32>
    %42 = arith.addf %40, %41 : vector<8x128xf32>
    %cst_15 = arith.constant -5.000000e+00 : f32
    %cst_16 = arith.constant 5.000000e+00 : f32
    %43 = vector.broadcast %cst_15 : f32 to vector<8x128xf32>
    %44 = arith.maximumf %43, %42 : vector<8x128xf32>
    %45 = vector.broadcast %cst_16 : f32 to vector<8x128xf32>
    %46 = arith.minimumf %45, %44 : vector<8x128xf32>
    %c0_17 = arith.constant 0 : index
    %c0_18 = arith.constant 0 : index
    %c0_19 = arith.constant 0 : index
    %47 = vector.load %arg10[%c0_17, %c0_18, %c0_19] : memref<8x8x128xf32, #tpu.memory_space<vmem>>, vector<1x8x128xf32>
    %48 = vector.shape_cast %47 : vector<1x8x128xf32> to vector<8x128xf32>
    %49 = vector.shape_cast %46 : vector<8x128xf32> to vector<1x8x128xf32>
    tpu.vector_store %arg10[%c0_17, %c0_18, %c0_19], %49 {strides = array<i32>} : memref<8x8x128xf32, #tpu.memory_space<vmem>>, vector<1x8x128xf32>,
    %cst_20 = arith.constant dense<0.000000e+00> : vector<8x384xf32>
    %50 = tpu.matmul %46, %9, %cst_20 {dimension_numbers = #tpu.dot_dimension_numbers<[1], [0], [0], [1], [0, 0, 1, 1], [], []>} : vector<8x128xf32>, vector<128x384xf32>, vector<8x384xf32> -> vector<8x384xf32>
    %51 = vector.extract_strided_slice %6 {offsets = [8, 0], sizes = [8, 128], strides = [1, 1]} : vector<64x128xf32> to vector<8x128xf32>
    %52 = vector.extract_strided_slice %50 {offsets = [0, 0], sizes = [8, 128], strides = [1, 1]} : vector<8x384xf32> to vector<8x128xf32>
    %53 = arith.addf %51, %52 : vector<8x128xf32>
    %54 = arith.negf %53 : vector<8x128xf32>
    %55 = math.exp %54 : vector<8x128xf32>
    %cst_21 = arith.constant 1.000000e+00 : f32
    %56 = vector.broadcast %cst_21 : f32 to vector<8x128xf32>
    %57 = arith.addf %56, %55 : vector<8x128xf32>
    %58 = arith.divf %56, %57 : vector<8x128xf32>
    %59 = vector.extract_strided_slice %7 {offsets = [8, 0], sizes = [8, 128], strides = [1, 1]} : vector<64x128xf32> to vector<8x128xf32>
    %60 = vector.extract_strided_slice %50 {offsets = [0, 128], sizes = [8, 128], strides = [1, 1]} : vector<8x384xf32> to vector<8x128xf32>
    %61 = arith.addf %59, %60 : vector<8x128xf32>
    %62 = arith.negf %61 : vector<8x128xf32>
    %63 = math.exp %62 : vector<8x128xf32>
    %cst_22 = arith.constant 1.000000e+00 : f32
    %64 = vector.broadcast %cst_22 : f32 to vector<8x128xf32>
    %65 = arith.addf %64, %63 : vector<8x128xf32>
    %66 = arith.divf %64, %65 : vector<8x128xf32>
    %67 = vector.extract_strided_slice %8 {offsets = [8, 0], sizes = [8, 128], strides = [1, 1]} : vector<64x128xf32> to vector<8x128xf32>
    %68 = vector.extract_strided_slice %50 {offsets = [0, 256], sizes = [8, 128], strides = [1, 1]} : vector<8x384xf32> to vector<8x128xf32>
    %69 = vector.broadcast %10 : vector<1x128xf32> to vector<8x128xf32>
    %70 = arith.addf %68, %69 : vector<8x128xf32>
    %71 = arith.mulf %58, %70 : vector<8x128xf32>
    %72 = arith.addf %67, %71 : vector<8x128xf32>
    %73 = math.tanh %72 : vector<8x128xf32>
    %cst_23 = arith.constant 1.000000e+00 : f32
    %74 = vector.broadcast %cst_23 : f32 to vector<8x128xf32>
    %75 = arith.subf %74, %66 : vector<8x128xf32>
    %76 = arith.mulf %75, %73 : vector<8x128xf32>
    %77 = arith.mulf %66, %46 : vector<8x128xf32>
    %78 = arith.addf %76, %77 : vector<8x128xf32>
    %cst_24 = arith.constant -5.000000e+00 : f32
    %cst_25 = arith.constant 5.000000e+00 : f32
    %79 = vector.broadcast %cst_24 : f32 to vector<8x128xf32>
    %80 = arith.maximumf %79, %78 : vector<8x128xf32>
    %81 = vector.broadcast %cst_25 : f32 to vector<8x128xf32>
    %82 = arith.minimumf %81, %80 : vector<8x128xf32>
    %c1 = arith.constant 1 : index
    %c0_26 = arith.constant 0 : index
    %c0_27 = arith.constant 0 : index
    %83 = vector.load %arg10[%c1, %c0_26, %c0_27] : memref<8x8x128xf32, #tpu.memory_space<vmem>>, vector<1x8x128xf32>
    %84 = vector.shape_cast %83 : vector<1x8x128xf32> to vector<8x128xf32>
    %85 = vector.shape_cast %82 : vector<8x128xf32> to vector<1x8x128xf32>
    tpu.vector_store %arg10[%c1, %c0_26, %c0_27], %85 {strides = array<i32>} : memref<8x8x128xf32, #tpu.memory_space<vmem>>, vector<1x8x128xf32>,
    %cst_28 = arith.constant dense<0.000000e+00> : vector<8x384xf32>
    %86 = tpu.matmul %82, %9, %cst_28 {dimension_numbers = #tpu.dot_dimension_numbers<[1], [0], [0], [1], [0, 0, 1, 1], [], []>} : vector<8x128xf32>, vector<128x384xf32>, vector<8x384xf32> -> vector<8x384xf32>
    %87 = vector.extract_strided_slice %6 {offsets = [16, 0], sizes = [8, 128], strides = [1, 1]} : vector<64x128xf32> to vector<8x128xf32>
    %88 = vector.extract_strided_slice %86 {offsets = [0, 0], sizes = [8, 128], strides = [1, 1]} : vector<8x384xf32> to vector<8x128xf32>
    %89 = arith.addf %87, %88 : vector<8x128xf32>
    %90 = arith.negf %89 : vector<8x128xf32>
    %91 = math.exp %90 : vector<8x128xf32>
    %cst_29 = arith.constant 1.000000e+00 : f32
    %92 = vector.broadcast %cst_29 : f32 to vector<8x128xf32>
    %93 = arith.addf %92, %91 : vector<8x128xf32>
    %94 = arith.divf %92, %93 : vector<8x128xf32>
    %95 = vector.extract_strided_slice %7 {offsets = [16, 0], sizes = [8, 128], strides = [1, 1]} : vector<64x128xf32> to vector<8x128xf32>
    %96 = vector.extract_strided_slice %86 {offsets = [0, 128], sizes = [8, 128], strides = [1, 1]} : vector<8x384xf32> to vector<8x128xf32>
    %97 = arith.addf %95, %96 : vector<8x128xf32>
    %98 = arith.negf %97 : vector<8x128xf32>
    %99 = math.exp %98 : vector<8x128xf32>
    %cst_30 = arith.constant 1.000000e+00 : f32
    %100 = vector.broadcast %cst_30 : f32 to vector<8x128xf32>
    %101 = arith.addf %100, %99 : vector<8x128xf32>
    %102 = arith.divf %100, %101 : vector<8x128xf32>
    %103 = vector.extract_strided_slice %8 {offsets = [16, 0], sizes = [8, 128], strides = [1, 1]} : vector<64x128xf32> to vector<8x128xf32>
    %104 = vector.extract_strided_slice %86 {offsets = [0, 256], sizes = [8, 128], strides = [1, 1]} : vector<8x384xf32> to vector<8x128xf32>
    %105 = vector.broadcast %10 : vector<1x128xf32> to vector<8x128xf32>
    %106 = arith.addf %104, %105 : vector<8x128xf32>
    %107 = arith.mulf %94, %106 : vector<8x128xf32>
    %108 = arith.addf %103, %107 : vector<8x128xf32>
    %109 = math.tanh %108 : vector<8x128xf32>
    %cst_31 = arith.constant 1.000000e+00 : f32
    %110 = vector.broadcast %cst_31 : f32 to vector<8x128xf32>
    %111 = arith.subf %110, %102 : vector<8x128xf32>
    %112 = arith.mulf %111, %109 : vector<8x128xf32>
    %113 = arith.mulf %102, %82 : vector<8x128xf32>
    %114 = arith.addf %112, %113 : vector<8x128xf32>
    %cst_32 = arith.constant -5.000000e+00 : f32
    %cst_33 = arith.constant 5.000000e+00 : f32
    %115 = vector.broadcast %cst_32 : f32 to vector<8x128xf32>
    %116 = arith.maximumf %115, %114 : vector<8x128xf32>
    %117 = vector.broadcast %cst_33 : f32 to vector<8x128xf32>
    %118 = arith.minimumf %117, %116 : vector<8x128xf32>
    %c2 = arith.constant 2 : index
    %c0_34 = arith.constant 0 : index
    %c0_35 = arith.constant 0 : index
    %119 = vector.load %arg10[%c2, %c0_34, %c0_35] : memref<8x8x128xf32, #tpu.memory_space<vmem>>, vector<1x8x128xf32>
    %120 = vector.shape_cast %119 : vector<1x8x128xf32> to vector<8x128xf32>
    %121 = vector.shape_cast %118 : vector<8x128xf32> to vector<1x8x128xf32>
    tpu.vector_store %arg10[%c2, %c0_34, %c0_35], %121 {strides = array<i32>} : memref<8x8x128xf32, #tpu.memory_space<vmem>>, vector<1x8x128xf32>,
    %cst_36 = arith.constant dense<0.000000e+00> : vector<8x384xf32>
    %122 = tpu.matmul %118, %9, %cst_36 {dimension_numbers = #tpu.dot_dimension_numbers<[1], [0], [0], [1], [0, 0, 1, 1], [], []>} : vector<8x128xf32>, vector<128x384xf32>, vector<8x384xf32> -> vector<8x384xf32>
    %123 = vector.extract_strided_slice %6 {offsets = [24, 0], sizes = [8, 128], strides = [1, 1]} : vector<64x128xf32> to vector<8x128xf32>
    %124 = vector.extract_strided_slice %122 {offsets = [0, 0], sizes = [8, 128], strides = [1, 1]} : vector<8x384xf32> to vector<8x128xf32>
    %125 = arith.addf %123, %124 : vector<8x128xf32>
    %126 = arith.negf %125 : vector<8x128xf32>
    %127 = math.exp %126 : vector<8x128xf32>
    %cst_37 = arith.constant 1.000000e+00 : f32
    %128 = vector.broadcast %cst_37 : f32 to vector<8x128xf32>
    %129 = arith.addf %128, %127 : vector<8x128xf32>
    %130 = arith.divf %128, %129 : vector<8x128xf32>
    %131 = vector.extract_strided_slice %7 {offsets = [24, 0], sizes = [8, 128], strides = [1, 1]} : vector<64x128xf32> to vector<8x128xf32>
    %132 = vector.extract_strided_slice %122 {offsets = [0, 128], sizes = [8, 128], strides = [1, 1]} : vector<8x384xf32> to vector<8x128xf32>
    %133 = arith.addf %131, %132 : vector<8x128xf32>
    %134 = arith.negf %133 : vector<8x128xf32>
    %135 = math.exp %134 : vector<8x128xf32>
    %cst_38 = arith.constant 1.000000e+00 : f32
    %136 = vector.broadcast %cst_38 : f32 to vector<8x128xf32>
    %137 = arith.addf %136, %135 : vector<8x128xf32>
    %138 = arith.divf %136, %137 : vector<8x128xf32>
    %139 = vector.extract_strided_slice %8 {offsets = [24, 0], sizes = [8, 128], strides = [1, 1]} : vector<64x128xf32> to vector<8x128xf32>
    %140 = vector.extract_strided_slice %122 {offsets = [0, 256], sizes = [8, 128], strides = [1, 1]} : vector<8x384xf32> to vector<8x128xf32>
    %141 = vector.broadcast %10 : vector<1x128xf32> to vector<8x128xf32>
    %142 = arith.addf %140, %141 : vector<8x128xf32>
    %143 = arith.mulf %130, %142 : vector<8x128xf32>
    %144 = arith.addf %139, %143 : vector<8x128xf32>
    %145 = math.tanh %144 : vector<8x128xf32>
    %cst_39 = arith.constant 1.000000e+00 : f32
    %146 = vector.broadcast %cst_39 : f32 to vector<8x128xf32>
    %147 = arith.subf %146, %138 : vector<8x128xf32>
    %148 = arith.mulf %147, %145 : vector<8x128xf32>
    %149 = arith.mulf %138, %118 : vector<8x128xf32>
    %150 = arith.addf %148, %149 : vector<8x128xf32>
    %cst_40 = arith.constant -5.000000e+00 : f32
    %cst_41 = arith.constant 5.000000e+00 : f32
    %151 = vector.broadcast %cst_40 : f32 to vector<8x128xf32>
    %152 = arith.maximumf %151, %150 : vector<8x128xf32>
    %153 = vector.broadcast %cst_41 : f32 to vector<8x128xf32>
    %154 = arith.minimumf %153, %152 : vector<8x128xf32>
    %c3 = arith.constant 3 : index
    %c0_42 = arith.constant 0 : index
    %c0_43 = arith.constant 0 : index
    %155 = vector.load %arg10[%c3, %c0_42, %c0_43] : memref<8x8x128xf32, #tpu.memory_space<vmem>>, vector<1x8x128xf32>
    %156 = vector.shape_cast %155 : vector<1x8x128xf32> to vector<8x128xf32>
    %157 = vector.shape_cast %154 : vector<8x128xf32> to vector<1x8x128xf32>
    tpu.vector_store %arg10[%c3, %c0_42, %c0_43], %157 {strides = array<i32>} : memref<8x8x128xf32, #tpu.memory_space<vmem>>, vector<1x8x128xf32>,
    %cst_44 = arith.constant dense<0.000000e+00> : vector<8x384xf32>
    %158 = tpu.matmul %154, %9, %cst_44 {dimension_numbers = #tpu.dot_dimension_numbers<[1], [0], [0], [1], [0, 0, 1, 1], [], []>} : vector<8x128xf32>, vector<128x384xf32>, vector<8x384xf32> -> vector<8x384xf32>
    %159 = vector.extract_strided_slice %6 {offsets = [32, 0], sizes = [8, 128], strides = [1, 1]} : vector<64x128xf32> to vector<8x128xf32>
    %160 = vector.extract_strided_slice %158 {offsets = [0, 0], sizes = [8, 128], strides = [1, 1]} : vector<8x384xf32> to vector<8x128xf32>
    %161 = arith.addf %159, %160 : vector<8x128xf32>
    %162 = arith.negf %161 : vector<8x128xf32>
    %163 = math.exp %162 : vector<8x128xf32>
    %cst_45 = arith.constant 1.000000e+00 : f32
    %164 = vector.broadcast %cst_45 : f32 to vector<8x128xf32>
    %165 = arith.addf %164, %163 : vector<8x128xf32>
    %166 = arith.divf %164, %165 : vector<8x128xf32>
    %167 = vector.extract_strided_slice %7 {offsets = [32, 0], sizes = [8, 128], strides = [1, 1]} : vector<64x128xf32> to vector<8x128xf32>
    %168 = vector.extract_strided_slice %158 {offsets = [0, 128], sizes = [8, 128], strides = [1, 1]} : vector<8x384xf32> to vector<8x128xf32>
    %169 = arith.addf %167, %168 : vector<8x128xf32>
    %170 = arith.negf %169 : vector<8x128xf32>
    %171 = math.exp %170 : vector<8x128xf32>
    %cst_46 = arith.constant 1.000000e+00 : f32
    %172 = vector.broadcast %cst_46 : f32 to vector<8x128xf32>
    %173 = arith.addf %172, %171 : vector<8x128xf32>
    %174 = arith.divf %172, %173 : vector<8x128xf32>
    %175 = vector.extract_strided_slice %8 {offsets = [32, 0], sizes = [8, 128], strides = [1, 1]} : vector<64x128xf32> to vector<8x128xf32>
    %176 = vector.extract_strided_slice %158 {offsets = [0, 256], sizes = [8, 128], strides = [1, 1]} : vector<8x384xf32> to vector<8x128xf32>
    %177 = vector.broadcast %10 : vector<1x128xf32> to vector<8x128xf32>
    %178 = arith.addf %176, %177 : vector<8x128xf32>
    %179 = arith.mulf %166, %178 : vector<8x128xf32>
    %180 = arith.addf %175, %179 : vector<8x128xf32>
    %181 = math.tanh %180 : vector<8x128xf32>
    %cst_47 = arith.constant 1.000000e+00 : f32
    %182 = vector.broadcast %cst_47 : f32 to vector<8x128xf32>
    %183 = arith.subf %182, %174 : vector<8x128xf32>
    %184 = arith.mulf %183, %181 : vector<8x128xf32>
    %185 = arith.mulf %174, %154 : vector<8x128xf32>
    %186 = arith.addf %184, %185 : vector<8x128xf32>
    %cst_48 = arith.constant -5.000000e+00 : f32
    %cst_49 = arith.constant 5.000000e+00 : f32
    %187 = vector.broadcast %cst_48 : f32 to vector<8x128xf32>
    %188 = arith.maximumf %187, %186 : vector<8x128xf32>
    %189 = vector.broadcast %cst_49 : f32 to vector<8x128xf32>
    %190 = arith.minimumf %189, %188 : vector<8x128xf32>
    %c4 = arith.constant 4 : index
    %c0_50 = arith.constant 0 : index
    %c0_51 = arith.constant 0 : index
    %191 = vector.load %arg10[%c4, %c0_50, %c0_51] : memref<8x8x128xf32, #tpu.memory_space<vmem>>, vector<1x8x128xf32>
    %192 = vector.shape_cast %191 : vector<1x8x128xf32> to vector<8x128xf32>
    %193 = vector.shape_cast %190 : vector<8x128xf32> to vector<1x8x128xf32>
    tpu.vector_store %arg10[%c4, %c0_50, %c0_51], %193 {strides = array<i32>} : memref<8x8x128xf32, #tpu.memory_space<vmem>>, vector<1x8x128xf32>,
    %cst_52 = arith.constant dense<0.000000e+00> : vector<8x384xf32>
    %194 = tpu.matmul %190, %9, %cst_52 {dimension_numbers = #tpu.dot_dimension_numbers<[1], [0], [0], [1], [0, 0, 1, 1], [], []>} : vector<8x128xf32>, vector<128x384xf32>, vector<8x384xf32> -> vector<8x384xf32>
    %195 = vector.extract_strided_slice %6 {offsets = [40, 0], sizes = [8, 128], strides = [1, 1]} : vector<64x128xf32> to vector<8x128xf32>
    %196 = vector.extract_strided_slice %194 {offsets = [0, 0], sizes = [8, 128], strides = [1, 1]} : vector<8x384xf32> to vector<8x128xf32>
    %197 = arith.addf %195, %196 : vector<8x128xf32>
    %198 = arith.negf %197 : vector<8x128xf32>
    %199 = math.exp %198 : vector<8x128xf32>
    %cst_53 = arith.constant 1.000000e+00 : f32
    %200 = vector.broadcast %cst_53 : f32 to vector<8x128xf32>
    %201 = arith.addf %200, %199 : vector<8x128xf32>
    %202 = arith.divf %200, %201 : vector<8x128xf32>
    %203 = vector.extract_strided_slice %7 {offsets = [40, 0], sizes = [8, 128], strides = [1, 1]} : vector<64x128xf32> to vector<8x128xf32>
    %204 = vector.extract_strided_slice %194 {offsets = [0, 128], sizes = [8, 128], strides = [1, 1]} : vector<8x384xf32> to vector<8x128xf32>
    %205 = arith.addf %203, %204 : vector<8x128xf32>
    %206 = arith.negf %205 : vector<8x128xf32>
    %207 = math.exp %206 : vector<8x128xf32>
    %cst_54 = arith.constant 1.000000e+00 : f32
    %208 = vector.broadcast %cst_54 : f32 to vector<8x128xf32>
    %209 = arith.addf %208, %207 : vector<8x128xf32>
    %210 = arith.divf %208, %209 : vector<8x128xf32>
    %211 = vector.extract_strided_slice %8 {offsets = [40, 0], sizes = [8, 128], strides = [1, 1]} : vector<64x128xf32> to vector<8x128xf32>
    %212 = vector.extract_strided_slice %194 {offsets = [0, 256], sizes = [8, 128], strides = [1, 1]} : vector<8x384xf32> to vector<8x128xf32>
    %213 = vector.broadcast %10 : vector<1x128xf32> to vector<8x128xf32>
    %214 = arith.addf %212, %213 : vector<8x128xf32>
    %215 = arith.mulf %202, %214 : vector<8x128xf32>
    %216 = arith.addf %211, %215 : vector<8x128xf32>
    %217 = math.tanh %216 : vector<8x128xf32>
    %cst_55 = arith.constant 1.000000e+00 : f32
    %218 = vector.broadcast %cst_55 : f32 to vector<8x128xf32>
    %219 = arith.subf %218, %210 : vector<8x128xf32>
    %220 = arith.mulf %219, %217 : vector<8x128xf32>
    %221 = arith.mulf %210, %190 : vector<8x128xf32>
    %222 = arith.addf %220, %221 : vector<8x128xf32>
    %cst_56 = arith.constant -5.000000e+00 : f32
    %cst_57 = arith.constant 5.000000e+00 : f32
    %223 = vector.broadcast %cst_56 : f32 to vector<8x128xf32>
    %224 = arith.maximumf %223, %222 : vector<8x128xf32>
    %225 = vector.broadcast %cst_57 : f32 to vector<8x128xf32>
    %226 = arith.minimumf %225, %224 : vector<8x128xf32>
    %c5 = arith.constant 5 : index
    %c0_58 = arith.constant 0 : index
    %c0_59 = arith.constant 0 : index
    %227 = vector.load %arg10[%c5, %c0_58, %c0_59] : memref<8x8x128xf32, #tpu.memory_space<vmem>>, vector<1x8x128xf32>
    %228 = vector.shape_cast %227 : vector<1x8x128xf32> to vector<8x128xf32>
    %229 = vector.shape_cast %226 : vector<8x128xf32> to vector<1x8x128xf32>
    tpu.vector_store %arg10[%c5, %c0_58, %c0_59], %229 {strides = array<i32>} : memref<8x8x128xf32, #tpu.memory_space<vmem>>, vector<1x8x128xf32>,
    %cst_60 = arith.constant dense<0.000000e+00> : vector<8x384xf32>
    %230 = tpu.matmul %226, %9, %cst_60 {dimension_numbers = #tpu.dot_dimension_numbers<[1], [0], [0], [1], [0, 0, 1, 1], [], []>} : vector<8x128xf32>, vector<128x384xf32>, vector<8x384xf32> -> vector<8x384xf32>
    %231 = vector.extract_strided_slice %6 {offsets = [48, 0], sizes = [8, 128], strides = [1, 1]} : vector<64x128xf32> to vector<8x128xf32>
    %232 = vector.extract_strided_slice %230 {offsets = [0, 0], sizes = [8, 128], strides = [1, 1]} : vector<8x384xf32> to vector<8x128xf32>
    %233 = arith.addf %231, %232 : vector<8x128xf32>
    %234 = arith.negf %233 : vector<8x128xf32>
    %235 = math.exp %234 : vector<8x128xf32>
    %cst_61 = arith.constant 1.000000e+00 : f32
    %236 = vector.broadcast %cst_61 : f32 to vector<8x128xf32>
    %237 = arith.addf %236, %235 : vector<8x128xf32>
    %238 = arith.divf %236, %237 : vector<8x128xf32>
    %239 = vector.extract_strided_slice %7 {offsets = [48, 0], sizes = [8, 128], strides = [1, 1]} : vector<64x128xf32> to vector<8x128xf32>
    %240 = vector.extract_strided_slice %230 {offsets = [0, 128], sizes = [8, 128], strides = [1, 1]} : vector<8x384xf32> to vector<8x128xf32>
    %241 = arith.addf %239, %240 : vector<8x128xf32>
    %242 = arith.negf %241 : vector<8x128xf32>
    %243 = math.exp %242 : vector<8x128xf32>
    %cst_62 = arith.constant 1.000000e+00 : f32
    %244 = vector.broadcast %cst_62 : f32 to vector<8x128xf32>
    %245 = arith.addf %244, %243 : vector<8x128xf32>
    %246 = arith.divf %244, %245 : vector<8x128xf32>
    %247 = vector.extract_strided_slice %8 {offsets = [48, 0], sizes = [8, 128], strides = [1, 1]} : vector<64x128xf32> to vector<8x128xf32>
    %248 = vector.extract_strided_slice %230 {offsets = [0, 256], sizes = [8, 128], strides = [1, 1]} : vector<8x384xf32> to vector<8x128xf32>
    %249 = vector.broadcast %10 : vector<1x128xf32> to vector<8x128xf32>
    %250 = arith.addf %248, %249 : vector<8x128xf32>
    %251 = arith.mulf %238, %250 : vector<8x128xf32>
    %252 = arith.addf %247, %251 : vector<8x128xf32>
    %253 = math.tanh %252 : vector<8x128xf32>
    %cst_63 = arith.constant 1.000000e+00 : f32
    %254 = vector.broadcast %cst_63 : f32 to vector<8x128xf32>
    %255 = arith.subf %254, %246 : vector<8x128xf32>
    %256 = arith.mulf %255, %253 : vector<8x128xf32>
    %257 = arith.mulf %246, %226 : vector<8x128xf32>
    %258 = arith.addf %256, %257 : vector<8x128xf32>
    %cst_64 = arith.constant -5.000000e+00 : f32
    %cst_65 = arith.constant 5.000000e+00 : f32
    %259 = vector.broadcast %cst_64 : f32 to vector<8x128xf32>
    %260 = arith.maximumf %259, %258 : vector<8x128xf32>
    %261 = vector.broadcast %cst_65 : f32 to vector<8x128xf32>
    %262 = arith.minimumf %261, %260 : vector<8x128xf32>
    %c6 = arith.constant 6 : index
    %c0_66 = arith.constant 0 : index
    %c0_67 = arith.constant 0 : index
    %263 = vector.load %arg10[%c6, %c0_66, %c0_67] : memref<8x8x128xf32, #tpu.memory_space<vmem>>, vector<1x8x128xf32>
    %264 = vector.shape_cast %263 : vector<1x8x128xf32> to vector<8x128xf32>
    %265 = vector.shape_cast %262 : vector<8x128xf32> to vector<1x8x128xf32>
    tpu.vector_store %arg10[%c6, %c0_66, %c0_67], %265 {strides = array<i32>} : memref<8x8x128xf32, #tpu.memory_space<vmem>>, vector<1x8x128xf32>,
    %cst_68 = arith.constant dense<0.000000e+00> : vector<8x384xf32>
    %266 = tpu.matmul %262, %9, %cst_68 {dimension_numbers = #tpu.dot_dimension_numbers<[1], [0], [0], [1], [0, 0, 1, 1], [], []>} : vector<8x128xf32>, vector<128x384xf32>, vector<8x384xf32> -> vector<8x384xf32>
    %267 = vector.extract_strided_slice %6 {offsets = [56, 0], sizes = [8, 128], strides = [1, 1]} : vector<64x128xf32> to vector<8x128xf32>
    %268 = vector.extract_strided_slice %266 {offsets = [0, 0], sizes = [8, 128], strides = [1, 1]} : vector<8x384xf32> to vector<8x128xf32>
    %269 = arith.addf %267, %268 : vector<8x128xf32>
    %270 = arith.negf %269 : vector<8x128xf32>
    %271 = math.exp %270 : vector<8x128xf32>
    %cst_69 = arith.constant 1.000000e+00 : f32
    %272 = vector.broadcast %cst_69 : f32 to vector<8x128xf32>
    %273 = arith.addf %272, %271 : vector<8x128xf32>
    %274 = arith.divf %272, %273 : vector<8x128xf32>
    %275 = vector.extract_strided_slice %7 {offsets = [56, 0], sizes = [8, 128], strides = [1, 1]} : vector<64x128xf32> to vector<8x128xf32>
    %276 = vector.extract_strided_slice %266 {offsets = [0, 128], sizes = [8, 128], strides = [1, 1]} : vector<8x384xf32> to vector<8x128xf32>
    %277 = arith.addf %275, %276 : vector<8x128xf32>
    %278 = arith.negf %277 : vector<8x128xf32>
    %279 = math.exp %278 : vector<8x128xf32>
    %cst_70 = arith.constant 1.000000e+00 : f32
    %280 = vector.broadcast %cst_70 : f32 to vector<8x128xf32>
    %281 = arith.addf %280, %279 : vector<8x128xf32>
    %282 = arith.divf %280, %281 : vector<8x128xf32>
    %283 = vector.extract_strided_slice %8 {offsets = [56, 0], sizes = [8, 128], strides = [1, 1]} : vector<64x128xf32> to vector<8x128xf32>
    %284 = vector.extract_strided_slice %266 {offsets = [0, 256], sizes = [8, 128], strides = [1, 1]} : vector<8x384xf32> to vector<8x128xf32>
    %285 = vector.broadcast %10 : vector<1x128xf32> to vector<8x128xf32>
    %286 = arith.addf %284, %285 : vector<8x128xf32>
    %287 = arith.mulf %274, %286 : vector<8x128xf32>
    %288 = arith.addf %283, %287 : vector<8x128xf32>
    %289 = math.tanh %288 : vector<8x128xf32>
    %cst_71 = arith.constant 1.000000e+00 : f32
    %290 = vector.broadcast %cst_71 : f32 to vector<8x128xf32>
    %291 = arith.subf %290, %282 : vector<8x128xf32>
    %292 = arith.mulf %291, %289 : vector<8x128xf32>
    %293 = arith.mulf %282, %262 : vector<8x128xf32>
    %294 = arith.addf %292, %293 : vector<8x128xf32>
    %cst_72 = arith.constant -5.000000e+00 : f32
    %cst_73 = arith.constant 5.000000e+00 : f32
    %295 = vector.broadcast %cst_72 : f32 to vector<8x128xf32>
    %296 = arith.maximumf %295, %294 : vector<8x128xf32>
    %297 = vector.broadcast %cst_73 : f32 to vector<8x128xf32>
    %298 = arith.minimumf %297, %296 : vector<8x128xf32>
    %c7 = arith.constant 7 : index
    %c0_74 = arith.constant 0 : index
    %c0_75 = arith.constant 0 : index
    %299 = vector.load %arg10[%c7, %c0_74, %c0_75] : memref<8x8x128xf32, #tpu.memory_space<vmem>>, vector<1x8x128xf32>
    %300 = vector.shape_cast %299 : vector<1x8x128xf32> to vector<8x128xf32>
    %301 = vector.shape_cast %298 : vector<8x128xf32> to vector<1x8x128xf32>
    tpu.vector_store %arg10[%c7, %c0_74, %c0_75], %301 {strides = array<i32>} : memref<8x8x128xf32, #tpu.memory_space<vmem>>, vector<1x8x128xf32>,
    %c0_76 = arith.constant 0 : index
    %c0_77 = arith.constant 0 : index
    %302 = vector.load %arg7[%c0_76, %c0_77] : memref<128x128xf32, #tpu.memory_space<vmem>>, vector<128x128xf32>
    %cst_78 = arith.constant dense<0.000000e+00> : vector<8x128xf32>
    %303 = tpu.matmul %298, %302, %cst_78 {dimension_numbers = #tpu.dot_dimension_numbers<[1], [0], [0], [1], [0, 0, 1, 1], [], []>} : vector<8x128xf32>, vector<128x128xf32>, vector<8x128xf32> -> vector<8x128xf32>
    %c0_79 = arith.constant 0 : index
    %c0_80 = arith.constant 0 : index
    %304 = vector.load %arg8[%c0_79, %c0_80] : memref<1x128xf32, #tpu.memory_space<vmem>>, vector<1x128xf32>
    %305 = vector.broadcast %304 : vector<1x128xf32> to vector<8x128xf32>
    %306 = arith.addf %303, %305 : vector<8x128xf32>
    %307 = tpu.iota {dimensions = array<i32: 1>} : vector<8x128xi32>
    %c32_i32 = arith.constant 32 : i32
    %308 = vector.broadcast %c32_i32 : i32 to vector<8x128xi32>
    %309 = arith.cmpi sge, %307, %308 : vector<8x128xi32>
    %c64_i32 = arith.constant 64 : i32
    %310 = vector.broadcast %c64_i32 : i32 to vector<8x128xi32>
    %311 = arith.cmpi slt, %307, %310 : vector<8x128xi32>
    %312 = arith.andi %309, %311 : vector<8x128xi1>
    %313 = math.exp %306 : vector<8x128xf32>
    %cst_81 = arith.constant 9.99999974E-5 : f32
    %314 = vector.broadcast %cst_81 : f32 to vector<8x128xf32>
    %315 = arith.addf %313, %314 : vector<8x128xf32>
    %316 = math.sqrt %315 : vector<8x128xf32>
    %317 = arith.select %312, %316, %306 : vector<8x128xi1>, vector<8x128xf32>
    %c0_82 = arith.constant 0 : index
    %c0_83 = arith.constant 0 : index
    %318 = vector.load %arg9[%c0_82, %c0_83] : memref<8x128xf32, #tpu.memory_space<vmem>>, vector<8x128xf32>
    tpu.vector_store %arg9[%c0_82, %c0_83], %317 {strides = array<i32>} : memref<8x128xf32, #tpu.memory_space<vmem>>, vector<8x128xf32>,
    return
  }
  func.func @transform_0(%arg0: i32) -> (i32, i32) {
    %c0_i32 = arith.constant 0 : i32
    %c0_i32_0 = arith.constant 0 : i32
    return %arg0, %c0_i32 : i32, i32
  }
  func.func @transform_1(%arg0: i32) -> (i32, i32) {
    %c0_i32 = arith.constant 0 : i32
    %c0_i32_0 = arith.constant 0 : i32
    %c0_i32_1 = arith.constant 0 : i32
    return %c0_i32, %c0_i32_0 : i32, i32
  }
  func.func @transform_2(%arg0: i32) -> (i32, i32) {
    %c0_i32 = arith.constant 0 : i32
    %c0_i32_0 = arith.constant 0 : i32
    %c0_i32_1 = arith.constant 0 : i32
    return %c0_i32, %c0_i32_0 : i32, i32
  }
  func.func @transform_3(%arg0: i32) -> (i32, i32) {
    %c0_i32 = arith.constant 0 : i32
    %c0_i32_0 = arith.constant 0 : i32
    %c0_i32_1 = arith.constant 0 : i32
    return %c0_i32, %c0_i32_0 : i32, i32
  }
  func.func @transform_4(%arg0: i32) -> (i32, i32) {
    %c0_i32 = arith.constant 0 : i32
    %c0_i32_0 = arith.constant 0 : i32
    %c0_i32_1 = arith.constant 0 : i32
    return %c0_i32, %c0_i32_0 : i32, i32
  }
  func.func @transform_5(%arg0: i32) -> (i32, i32) {
    %c0_i32 = arith.constant 0 : i32
    %c0_i32_0 = arith.constant 0 : i32
    %c0_i32_1 = arith.constant 0 : i32
    return %c0_i32, %c0_i32_0 : i32, i32
  }
  func.func @transform_6(%arg0: i32) -> (i32, i32) {
    %c0_i32 = arith.constant 0 : i32
    %c0_i32_0 = arith.constant 0 : i32
    %c0_i32_1 = arith.constant 0 : i32
    return %c0_i32, %c0_i32_0 : i32, i32
  }
  func.func @transform_7(%arg0: i32) -> (i32, i32) {
    %c0_i32 = arith.constant 0 : i32
    %c0_i32_0 = arith.constant 0 : i32
    %c0_i32_1 = arith.constant 0 : i32
    return %c0_i32, %c0_i32_0 : i32, i32
  }
  func.func @transform_8(%arg0: i32) -> (i32, i32) {
    %c0_i32 = arith.constant 0 : i32
    %c0_i32_0 = arith.constant 0 : i32
    return %arg0, %c0_i32 : i32, i32
  }
  func.func @transform_9(%arg0: i32) -> (i32, i32, i32) {
    %c0_i32 = arith.constant 0 : i32
    %c0_i32_0 = arith.constant 0 : i32
    %c0_i32_1 = arith.constant 0 : i32
    return %c0_i32, %arg0, %c0_i32_0 : i32, i32, i32
  }
}

</mosaic_0001>

<bundles_post_ra>
// kernel: encoder_forward.1
= control target key start
LH: loop header
LB: loop body
LE: loop exit
PB: predicated region body
PF: predicated region fallthrough
CT: control target
= control target key end

     0   :  { %v2983_v3 = vmov 0.0   ;;  %vm68_vm0 = vcmask 261120   ;;  %v2984_v57 = vmov 0.0|0.0   ;;  %vm2985_vm1 = vmmov 0   ;;  %s3783_s2 = inlined_call_operand.vmem [shape: f32[32,384], index: 2, kind: input, shape index: {}]   ;;  %s3784_s0 = inlined_call_operand.vmem [shape: f32[64,32], index: 0, kind: input, shape index: {}]   ;;  %s3785_s4 = inlined_call_operand.vmem [shape: f32[128,384], index: 4, kind: input, shape index: {}]   ;;  %s3786_s1 = inlined_call_operand.vmem [shape: f32[1,128], index: 1, kind: input, shape index: {}]   ;;  %s3787_s3 = inlined_call_operand.vmem [shape: f32[1,384], index: 3, kind: input, shape index: {}]   ;;  %s3788_s5 = inlined_call_operand.vmem [shape: f32[1,128], index: 5, kind: input, shape index: {}]   ;;  %s3789_s9 = inlined_call_operand.vmem [shape: f32[8,8,128], index: 9, kind: output, shape index: {1}]   ;;  %s3790_s6 = inlined_call_operand.vmem [shape: f32[128,128], index: 6, kind: input, shape index: {}]   ;;  %s3791_s7 = inlined_call_operand.vmem [shape: f32[1,128], index: 7, kind: input, shape index: {}]   ;;  %s3792_s8 = inlined_call_operand.vmem [shape: f32[8,128], index: 8, kind: output, shape index: {0}]  }
   0x1   :  { %v40_v0 = vld [vmem:[%s3783_s2 + $0x8] sm:$0xff]  ;;  %v43_v1 = vld [vmem:[%s3783_s2 + $0x20] sm:$0xff]  ;;  %157 = vmatprep.mubr.f32.mxu0 %v2983_v3  ;;  %v42_v5 = vld [vmem:[%s3783_s2 + $0x18] sm:$0xff] }
   0x2   :  { %v39_v2 = vld [vmem:[%s3783_s2] sm:$0xff]  ;;  %v2376_v4 = vpack.c.bf16 %v43_v1, %v40_v0  ;;  %v46_v6 = vld [vmem:[%s3783_s2 + $0x38] sm:$0xff]  ;;  %v49_v7 = vld [vmem:[%s3783_s2 + $0x50] sm:$0xff] }
   0x3   :  { %v2378_v8 = vpack.c.bf16 %v42_v5, %v39_v2  ;;  %v2380_v9 = vpack.c.bf16 %v49_v7, %v46_v6  ;;  %v45_v10 = vld [vmem:[%s3783_s2 + $0x30] sm:$0xff]  ;;  %v48_v11 = vld [vmem:[%s3783_s2 + $0x48] sm:$0xff]  ;;  %v31_v12 = vld [vmem:[%s3784_s0] sm:$0xff] }
   0x4   :  { %2377 = vmatprep.subr.bf16.mxu0 %v2376_v4  ;;  %v312_v13 = vld [vmem:[%s3785_s4 + $0x8] sm:$0xff]  ;;  %v315_v14 = vld [vmem:[%s3785_s4 + $0x20] sm:$0xff]  ;;  %2049 = vmatprep.mubr.msk.f32.mxu1 %vm68_vm0, %v31_v12  ;;  %v2382_v15 = vpack.c.bf16 %v48_v11, %v45_v10  ;;  %v314_v18 = vld [vmem:[%s3785_s4 + $0x18] sm:$0xff] }
   0x5   :  { %2379 = vmatpush1.bf16.msra.mxu0 %v2378_v8  ;;  %v3071_v16 = vpack.c.bf16 %v315_v14, %v312_v13  ;;  %v311_v17 = vld [vmem:[%s3785_s4] sm:$0xff]  ;;  %v318_v19 = vld [vmem:[%s3785_s4 + $0x38] sm:$0xff]  ;;  %v321_v20 = vld [vmem:[%s3785_s4 + $0x50] sm:$0xff] }
   0x6   :  { %2381 = vmatprep.subr.bf16.mxu0 %v2380_v9  ;;  %v3085_v21 = vpack.c.bf16 %v314_v18, %v311_v17  ;;  %v3088_v22 = vpack.c.bf16 %v321_v20, %v318_v19  ;;  %v317_v23 = vld [vmem:[%s3785_s4 + $0x30] sm:$0xff]  ;;  %v320_v24 = vld [vmem:[%s3785_s4 + $0x48] sm:$0xff]  ;;  %v327_v26 = vld [vmem:[%s3785_s4 + $0x80] sm:$0xff] }
   0x7   :  { %v324_v25 = vld [vmem:[%s3785_s4 + $0x68] sm:$0xff]  ;;  %v41_v27 = vld [vmem:[%s3783_s2 + $0x10] sm:$0xff]  ;;  %v3114_v30 = vpack.c.bf16 %v320_v24, %v317_v23  ;;  %v323_v31 = vld [vmem:[%s3785_s4 + $0x60] sm:$0xff] }
   0x8   :  { %v44_v28 = vld [vmem:[%s3783_s2 + $0x28] sm:$0xff]  ;;  %v3120_v33 = vpack.c.bf16 %v327_v26, %v324_v25  ;;  %v326_v34 = vld [vmem:[%s3785_s4 + $0x78] sm:$0xff]  ;;  %v47_v35 = vld [vmem:[%s3783_s2 + $0x40] sm:$0xff] }
   0x9   :  { %2383 = vmatpush1.bf16.msra.mxu0 %v2382_v15  ;;  %v32_v29 = vld [vmem:[%s3784_s0 + $0x8] sm:$0xff]  ;;  %v2384_v32 = vpack.c.bf16 %v44_v28, %v41_v27  ;;  %v50_v36 = vld [vmem:[%s3783_s2 + $0x58] sm:$0xff]  ;;  %v333_v38 = vld [vmem:[%s3785_s4 + $0xb0] sm:$0xff]  ;;  %v3143_v41 = vpack.c.bf16 %v326_v34, %v323_v31 }
   0xa   :  { %2393 = vmatprep.subr.bf16.mxu0 %v3071_v16  ;;  %v330_v37 = vld [vmem:[%s3785_s4 + $0x98] sm:$0xff]  ;;  %v2388_v39 = vpack.c.bf16 %v50_v36, %v47_v35  ;;  %v33_v40 = vld [vmem:[%s3784_s0 + $0x10] sm:$0xff]  ;;  %v316_v43 = vld [vmem:[%s3785_s4 + $0x28] sm:$0xff] }
   0xb   :  { %2385 = vmatprep.subr.bf16.mxu1 %v2384_v32  ;;  %v313_v42 = vld [vmem:[%s3785_s4 + $0x10] sm:$0xff]  ;;  %v3152_v44 = vpack.c.bf16 %v333_v38, %v330_v37  ;;  %v332_v46 = vld [vmem:[%s3785_s4 + $0xa8] sm:$0xff]  ;;  %v339_v48 = vld [vmem:[%s3785_s4 + $0xe0] sm:$0xff] }
   0xc   :  { %1826 = vmatmul.mubr.msk.f32.vlgmr.msra.gmra.mrb[0].mxu0 %vm68_vm0, %v31_v12  ;;  %2387 = vmatpush3.bf16.msra.mxu1 %v2384_v32  ;;  %v329_v45 = vld [vmem:[%s3785_s4 + $0x90] sm:$0xff]  ;;  %v336_v47 = vld [vmem:[%s3785_s4 + $0xc8] sm:$0xff]  ;;  %v3167_v49 = vpack.c.bf16 %v316_v43, %v313_v42  ;;  %v34_v50 = vld [vmem:[%s3784_s0 + $0x18] sm:$0xff] }
   0xd   :  { %2395 = vmatpush1.bf16.msra.mxu0 %v3085_v21  ;;  %163 = vmatprep.mubr.f32.mxu0 %v2983_v3  ;;  %v3174_v51 = vpack.c.bf16 %v332_v46, %v329_v45  ;;  %v319_v52 = vld [vmem:[%s3785_s4 + $0x40] sm:$0xff]  ;;  %v322_v53 = vld [vmem:[%s3785_s4 + $0x58] sm:$0xff]  ;;  %v3183_v54 = vpack.c.bf16 %v339_v48, %v336_v47  ;;  %v345_v59 = vld [vmem:[%s3785_s4 + $0x110] sm:$0xff]  ;;  %v53_v45 = vlaneseq }
   0xe   :  { %2397 = vmatprep.subr.bf16.mxu0 %v3088_v22  ;;  %2389 = vmatprep.subr.bf16.mxu1 %v2388_v39  ;;  %v335_v55 = vld [vmem:[%s3785_s4 + $0xc0] sm:$0xff]  ;;  %v338_v56 = vld [vmem:[%s3785_s4 + $0xd8] sm:$0xff]  ;;  %v3201_v60 = vpack.c.bf16 %v322_v53, %v319_v52  ;;  %v325_v63 = vld [vmem:[%s3785_s4 + $0x70] sm:$0xff] }
   0xf   :  { %v342_v58 = vld [vmem:[%s3785_s4 + $0xf8] sm:$0xff]  ;;  %v35_v61 = vld [vmem:[%s3784_s0 + $0x20] sm:$0xff]  ;;  %v3208_v62 = vpack.c.bf16 %v338_v56, %v335_v55  ;;  %v328_v0 = vld [vmem:[%s3785_s4 + $0x88] sm:$0xff]  ;;  %v54_v46 = vshrl.u32 %v53_v45, 7 }
  0x10   :  { %1827 = vmatmul.mubr.msk.f32.gmra.mrb[2].mxu0 %vm68_vm0, %v32_v29  ;;  %2391 = vmatpush3.bf16.msra.mxu1 %v2388_v39  ;;  %v3217_v1 = vpack.c.bf16 %v345_v59, %v342_v58  ;;  %v341_v2 = vld [vmem:[%s3785_s4 + $0xf0] sm:$0xff]  ;;  %v344_v4 = vld [vmem:[%s3785_s4 + $0x108] sm:$0xff]  ;;  %v351_v6 = vld [vmem:[%s3785_s4 + $0x140] sm:$0xff]  ;;  %v3235_v7 = vpack.c.bf16 %v328_v0, %v325_v63 }
  0x11   :  { %2399 = vmatpush1.bf16.msra.mxu0 %v3114_v30  ;;  %169 = vmatprep.mubr.f32.mxu0 %v2983_v3  ;;  %v348_v5 = vld [vmem:[%s3785_s4 + $0x128] sm:$0xff]  ;;  %v3242_v9 = vpack.c.bf16 %v344_v4, %v341_v2  ;;  %v331_v10 = vld [vmem:[%s3785_s4 + $0xa0] sm:$0xff]  ;;  %v334_v11 = vld [vmem:[%s3785_s4 + $0xb8] sm:$0xff]  ;;  %v63_v47 = vsub.s32 2, %v54_v46  ;;  %v55_v63 = vsub.s32 0, %v54_v46  ;;  %v59_v2 = vsub.s32 1, %v54_v46 }
  0x12   :  { %2401 = vmatprep.subr.bf16.mxu0 %v3120_v33  ;;  %2424 = vmatprep.subr.bf16.mxu1 %v2984_v57  ;;  %v36_v8 = vld [vmem:[%s3784_s0 + $0x28] sm:$0xff]  ;;  %v3251_v12 = vpack.c.bf16 %v351_v6, %v348_v5  ;;  %v347_v13 = vld [vmem:[%s3785_s4 + $0x120] sm:$0xff]  ;;  %v350_v14 = vld [vmem:[%s3785_s4 + $0x138] sm:$0xff]  ;;  %v3269_v18 = vpack.c.bf16 %v334_v11, %v331_v10 }
  0x13   :  { %2050 = vmatmul.mubr.msk.f32.vlgmr.msra.gmra.mrb[0].mxu1 %vm68_vm0, %v32_v29  ;;  %v354_v15 = vld [vmem:[%s3785_s4 + $0x158] sm:$0xff]  ;;  %v357_v17 = vld [vmem:[%s3785_s4 + $0x170] sm:$0xff]  ;;  %v3276_v20 = vpack.c.bf16 %v350_v14, %v347_v13  ;;  %v340_v24 = vld [vmem:[%s3785_s4 + $0xe8] sm:$0xff] }
  0x14   :  { %1828 = vmatmul.mubr.msk.f32.gmra.mrb[4].mxu0 %vm68_vm0, %v33_v40  ;;  %2426 = vmatpush3.bf16.msra.mxu1 %v3167_v49  ;;  %v37_v19 = vld [vmem:[%s3784_s0 + $0x30] sm:$0xff]  ;;  %v3285_v25 = vpack.c.bf16 %v357_v17, %v354_v15  ;;  %v356_v27 = vld [vmem:[%s3785_s4 + $0x168] sm:$0xff]  ;;  %v38_v29 = vld [vmem:[%s3784_s0 + $0x38] sm:$0xff] }
  0x15   :  { %2403 = vmatpush1.bf16.msra.mxu0 %v3143_v41  ;;  %175 = vmatprep.mubr.f32.mxu0 %v2983_v3  ;;  %v337_v23 = vld [vmem:[%s3785_s4 + $0xd0] sm:$0xff]  ;;  %v343_v32 = vld [vmem:[%s3785_s4 + $0x100] sm:$0xff]  ;;  %v346_v34 = vld [vmem:[%s3785_s4 + $0x118] sm:$0xff] }
  0x16   :  { %2405 = vmatprep.subr.bf16.mxu0 %v3152_v44  ;;  %2427 = vmatprep.subr.bf16.mxu1 %v2984_v57  ;;  %v353_v26 = vld [vmem:[%s3785_s4 + $0x150] sm:$0xff]  ;;  %v3297_v28 = vpack.c.bf16 %v340_v24, %v337_v23  ;;  %v3317_v35 = vpack.c.bf16 %v346_v34, %v343_v32  ;;  %v3324_v36 = vld [vmem:[%s3786_s1] ss:$0 sm:$0xff]  ;;  %v352_v38 = vld [vmem:[%s3785_s4 + $0x148] sm:$0xff] }
  0x17   :  { %2052 = vmatprep.mubr.msk.f32.mxu1 %vm68_vm0, %v33_v40  ;;  %v3304_v31 = vpack.c.bf16 %v356_v27, %v353_v26  ;;  %v349_v37 = vld [vmem:[%s3785_s4 + $0x130] sm:$0xff]  ;;  %v355_v40 = vld [vmem:[%s3785_s4 + $0x160] sm:$0xff]  ;;  %v358_v42 = vld [vmem:[%s3785_s4 + $0x178] sm:$0xff] }
  0x18   :  { %1829 = vmatmul.mubr.msk.f32.gmra.mrb[6].mxu0 %vm68_vm0, %v34_v50  ;;  %2429 = vmatpush3.bf16.msra.mxu1 %v3201_v60  ;;  %v3338_v39 = vpack.c.bf16 %v352_v38, %v349_v37  ;;  %v3353_v43 = vpack.c.bf16 %v358_v42, %v355_v40  ;;  %v51_v48 = vld [vmem:[%s3787_s3] sm:$0x7] }
  0x19   :  { %2407 = vmatpush1.bf16.msra.mxu0 %v3174_v51  ;;  %181 = vmatprep.mubr.f32.mxu0 %v2983_v3  ;;  %v3403_v6 = vrot.slane %v51_v48, %v55_v63  ;;  %v3407_v13 = vrot.slane %v51_v48, %v59_v2  ;;  %v3418_v40 = vld [vmem:[%s3788_s5] ss:$0 sm:$0xff] }
  0x1a   :  { %2409 = vmatprep.subr.bf16.mxu0 %v3183_v54  ;;  %2430 = vmatprep.subr.bf16.mxu1 %v2984_v57 }
  0x1b   :  { %2053 = vmatmul.mubr.msk.f32.gmra.mrb[2].mxu1 %vm68_vm0, %v34_v50  ;;  %v64_v50 = vrot.slane %v51_v48, %v63_v47 }
  0x1c   :  { %1830 = vmatmul.mubr.msk.f32.gmra.mrb[8].mxu0 %vm68_vm0, %v35_v61  ;;  %2432 = vmatpush3.bf16.msra.mxu1 %v3235_v7 }
  0x1d   :  { %2411 = vmatpush1.bf16.msra.mxu0 %v3208_v62  ;;  %187 = vmatprep.mubr.f32.mxu0 %v2983_v3 }
  0x1e   :  { %2413 = vmatprep.subr.bf16.mxu0 %v3217_v1  ;;  %2433 = vmatprep.subr.bf16.mxu1 %v2984_v57 }
  0x1f   :  { %2055 = vmatprep.mubr.msk.f32.mxu1 %vm68_vm0, %v35_v61 }
  0x20   :  { %1831 = vmatmul.mubr.msk.f32.gmra.mrb[10].mxu0 %vm68_vm0, %v36_v8  ;;  %2435 = vmatpush3.bf16.msra.mxu1 %v3269_v18 }
  0x21   :  { %2415 = vmatpush1.bf16.msra.mxu0 %v3242_v9  ;;  %193 = vmatprep.mubr.f32.mxu0 %v2983_v3 }
  0x22   :  { %2417 = vmatprep.subr.bf16.mxu0 %v3251_v12  ;;  %2436 = vmatprep.subr.bf16.mxu1 %v2984_v57 }
  0x23   :  { %2056 = vmatmul.mubr.msk.f32.gmra.mrb[4].mxu1 %vm68_vm0, %v36_v8 }
  0x24   :  { %1832 = vmatmul.mubr.msk.f32.gmra.mrb[12].mxu0 %vm68_vm0, %v37_v19  ;;  %2438 = vmatpush3.bf16.msra.mxu1 %v3297_v28 }
  0x25   :  { %2419 = vmatpush1.bf16.msra.mxu0 %v3276_v20  ;;  %199 = vmatprep.mubr.f32.mxu0 %v2983_v3 }
  0x26   :  { %2421 = vmatprep.subr.bf16.mxu0 %v3285_v25  ;;  %2439 = vmatprep.subr.bf16.mxu1 %v2984_v57 }
  0x27   :  { %2058 = vmatprep.mubr.msk.f32.mxu1 %vm68_vm0, %v37_v19 }
  0x28   :  { %1833 = vmatmul.mubr.msk.f32.gmra.mrb[14].mxu0 %vm68_vm0, %v38_v29  ;;  %2059 = vmatmul.mubr.msk.f32.gmra.mrb[6].mxu1 %vm68_vm0, %v38_v29 }
  0x29   :  { %2423 = vmatpush1.bf16.msra.mxu0 %v3304_v31  ;;  %431 = vmatprep.mubr.f32.mxu0 %v2983_v3 }
  0x2a   :  { %2449 = vmatprep.subr.bf16.mxu0 %v3071_v16  ;;  %2441 = vmatpush3.bf16.msra.mxu1 %v3317_v35 }
  0x2b   :  { %2442 = vmatprep.subr.bf16.mxu1 %v2984_v57  ;;  %2093 = vmatprep.mubr.msk.f32.mxu1 %vm2985_vm1, %v2983_v3 }
  0x2c   :  { %432 = vmatmul.mubr.f32.vlgmr.msra.gmra.mrb[0].mxu0 %v3324_v36 }
  0x2d   :  { %2451 = vmatpush1.bf16.msra.mxu0 %v3085_v21  ;;  %603 = vmatprep.mubr.f32.mxu0 %v2983_v3 }
  0x2e   :  { %2453 = vmatprep.subr.bf16.mxu0 %v3088_v22  ;;  %2444 = vmatpush3.bf16.msra.mxu1 %v3338_v39 }
  0x2f   :  { %2445 = vmatprep.subr.bf16.mxu1 %v2984_v57 }
  0x31   :  { %2455 = vmatpush1.bf16.msra.mxu0 %v3114_v30 }
  0x32   :  { %2457 = vmatprep.subr.bf16.mxu0 %v3120_v33  ;;  %2447 = vmatpush3.bf16.msra.mxu1 %v3353_v43 }
  0x33   :  { %2480 = vmatprep.subr.bf16.mxu1 %v2984_v57 }
  0x35   :  { %2459 = vmatpush1.bf16.msra.mxu0 %v3143_v41  ;;  %2094 = vmatmul.mubr.f32.vlgmr.msra.gmra.mrb[8].mxu1 %v3324_v36 }
  0x36   :  { %2461 = vmatprep.subr.bf16.mxu0 %v3152_v44  ;;  %2482 = vmatpush3.bf16.msra.mxu1 %v3167_v49 }
  0x37   :  { %2128 = vmatprep.mubr.msk.f32.mxu1 %vm2985_vm1, %v2983_v3  ;;  %2483 = vmatprep.subr.bf16.mxu1 %v2984_v57 }
  0x39   :  { %2463 = vmatpush1.bf16.msra.mxu0 %v3174_v51 }
  0x3a   :  { %2465 = vmatprep.subr.bf16.mxu0 %v3183_v54  ;;  %2485 = vmatpush3.bf16.msra.mxu1 %v3201_v60 }
  0x3b   :  { %2486 = vmatprep.subr.bf16.mxu1 %v2984_v57 }
  0x3d   :  { %2467 = vmatpush1.bf16.msra.mxu0 %v3208_v62 }
  0x3e   :  { %2469 = vmatprep.subr.bf16.mxu0 %v3217_v1  ;;  %2488 = vmatpush3.bf16.msra.mxu1 %v3235_v7 }
  0x3f   :  { %2489 = vmatprep.subr.bf16.mxu1 %v2984_v57 }
  0x41   :  { %2471 = vmatpush1.bf16.msra.mxu0 %v3242_v9 }
  0x42   :  { %2473 = vmatprep.subr.bf16.mxu0 %v3251_v12  ;;  %2491 = vmatpush3.bf16.msra.mxu1 %v3269_v18 }
  0x43   :  { %2492 = vmatprep.subr.bf16.mxu1 %v2984_v57 }
  0x45   :  { %2475 = vmatpush1.bf16.msra.mxu0 %v3276_v20 }
  0x46   :  { %2477 = vmatprep.subr.bf16.mxu0 %v3285_v25  ;;  %2494 = vmatpush3.bf16.msra.mxu1 %v3297_v28 }
  0x47   :  { %2495 = vmatprep.subr.bf16.mxu1 %v2984_v57 }
  0x49   :  { %2479 = vmatpush1.bf16.msra.mxu0 %v3304_v31 }
  0x4a   :  { %2505 = vmatprep.subr.bf16.mxu0 %v3071_v16  ;;  %2497 = vmatpush3.bf16.msra.mxu1 %v3317_v35 }
  0x4b   :  { %2498 = vmatprep.subr.bf16.mxu1 %v2984_v57 }
  0x4e   :  { %2500 = vmatpush3.bf16.msra.mxu1 %v3338_v39 }
  0x4f   :  { %2501 = vmatprep.subr.bf16.mxu1 %v2984_v57 }
  0x52   :  { %2503 = vmatpush3.bf16.msra.mxu1 %v3353_v43 }
  0x53   :  { %2536 = vmatprep.subr.bf16.mxu1 %v2984_v57 }
  0xe6   :  { %v2051_v52 = vpop.f32.mrb[0].mxu1 }
  0xe7   :  { %v3395_v53 = vadd.f32 %v2051_v52, %v64_v50  ;;  %v272_v55 = vpop.f32.mrb[1].mxu1 }
  0xe8   :  { %v273_v48 = vadd.f32 %v272_v55, %v64_v50 }
  0xee   :  { %v2054_v56 = vpop.f32.mrb[2].mxu1 }
  0xef   :  { %v3397_v58 = vadd.f32 %v2054_v56, %v64_v50  ;;  %v282_v59 = vpop.f32.mrb[3].mxu1 }
  0xf0   :  { %v3399_v61 = vadd.f32 %v282_v59, %v64_v50 }
  0xf6   :  { %v2057_v0 = vpop.f32.mrb[4].mxu1 }
  0xf7   :  { %v3401_v4 = vadd.f32 %v2057_v0, %v64_v50  ;;  %v292_v5 = vpop.f32.mrb[5].mxu1 }
  0xf8   :  { %v3405_v8 = vadd.f32 %v292_v5, %v64_v50 }
  0xfb   :  { %v2060_v10 = vpop.f32.mrb[6].mxu1 }
  0xfc   :  { %v3409_v14 = vadd.f32 %v2060_v10, %v64_v50  ;;  %v302_v15 = vpop.f32.mrb[7].mxu1 }
  0xfd   :  { %v3412_v23 = vadd.f32 %v302_v15, %v64_v50 }
  0xff   :  { %v433_v11 = vpop.f32.mrb[0].mxu0 }
 0x100   :  { %v2864_v17 = vadd.f32 %v433_v11, %v3403_v6  ;;  %v435_v19 = vpop.f32.mrb[1].mxu0 }
 0x101   :  { %v2865_v26 = vadd.f32 %v435_v19, %v3407_v13 }
 0x102   :  { %v1843_v24 = vmul.f32 -1.442695, %v2864_v17 }
 0x103   :  { %v1844_v27 = vmul.f32 -1.442695, %v2865_v26 }
 0x104   :  { %2899 = vpow2.f32 %v1843_v24 }
 0x105   :  { %2901 = vpow2.f32 %v1844_v27 }
 0x108   :  { %v504_v29 = vpop.f32.mrb[8].mxu1 }
 0x109   :  { %v2095_v32 = vpop.f32.mrb[9].mxu1  ;;  %v528_v46 = vadd.f32 %v3418_v40, %v504_v29 }
 0x10e   :  { %v2900_v34 = vpop.eup %2899 }
 0x10f   :  { %v512_v37 = vadd.f32 1.0, %v2900_v34  ;;  %v2902_v38 = vpop.eup %2901 }
 0x110   :  { %v519_v42 = vadd.f32 1.0, %v2902_v38 }
 0x111   :  { %2903 = vrcp.f32 %v512_v37 }
 0x112   :  { %2905 = vrcp.f32 %v519_v42 }
 0x11b   :  { %v2904_v47 = vpop.eup %2903 }
 0x11c   :  { %v529_v52 = vmul.f32 %v2904_v47, %v528_v46  ;;  %v2906_v59 = vpop.eup %2905 }
 0x11d   :  { %v532_v63 = vsub.f32 1.0, %v2906_v59  ;;  %v534_v5 = vmul.f32 %v2906_v59, %v3324_v36 }
 0x11e   :  { %v530_v56 = vadd.f32 %v529_v52, %v273_v48 }
 0x120   :  { %2907 = vtanh.f32 %v530_v56 }
 0x12a   :  { %v2908_v0 = vpop.eup %2907 }
 0x12b   :  { %v533_v2 = vmul.f32 %v2908_v0, %v532_v63 }
 0x12d   :  { %v535_v10 = vadd.f32 %v534_v5, %v533_v2 }
 0x12f   :  { %v3422_v11 = vclamps-f32 %v535_v10, 5.0 }
 0x131   :  { %538 = vst [vmem:[%s3789_s9] sm:$0xff] %v3422_v11  ;;  %604 = vmatmul.mubr.f32.vlgmr.msra.gmra.mrb[2].mxu0 %v3422_v11  ;;  %2129 = vmatmul.mubr.f32.vlgmr.msra.gmra.mrb[10].mxu1 %v3422_v11 }
 0x132   :  { %2507 = vmatpush1.bf16.msra.mxu0 %v3085_v21  ;;  %2538 = vmatpush3.bf16.msra.mxu1 %v3167_v49 }
 0x133   :  { %2509 = vmatprep.subr.bf16.mxu0 %v3088_v22  ;;  %2539 = vmatprep.subr.bf16.mxu1 %v2984_v57 }
 0x134   :  { %770 = vmatprep.mubr.f32.mxu0 %v2983_v3  ;;  %2163 = vmatprep.mubr.msk.f32.mxu1 %vm2985_vm1, %v2983_v3 }
 0x136   :  { %2511 = vmatpush1.bf16.msra.mxu0 %v3114_v30  ;;  %2541 = vmatpush3.bf16.msra.mxu1 %v3201_v60 }
 0x137   :  { %2513 = vmatprep.subr.bf16.mxu0 %v3120_v33  ;;  %2542 = vmatprep.subr.bf16.mxu1 %v2984_v57 }
 0x13a   :  { %2515 = vmatpush1.bf16.msra.mxu0 %v3143_v41  ;;  %2544 = vmatpush3.bf16.msra.mxu1 %v3235_v7 }
 0x13b   :  { %2517 = vmatprep.subr.bf16.mxu0 %v3152_v44  ;;  %2545 = vmatprep.subr.bf16.mxu1 %v2984_v57 }
 0x13e   :  { %2519 = vmatpush1.bf16.msra.mxu0 %v3174_v51  ;;  %2547 = vmatpush3.bf16.msra.mxu1 %v3269_v18 }
 0x13f   :  { %2521 = vmatprep.subr.bf16.mxu0 %v3183_v54  ;;  %2548 = vmatprep.subr.bf16.mxu1 %v2984_v57 }
 0x142   :  { %2523 = vmatpush1.bf16.msra.mxu0 %v3208_v62  ;;  %2550 = vmatpush3.bf16.msra.mxu1 %v3297_v28 }
 0x143   :  { %2525 = vmatprep.subr.bf16.mxu0 %v3217_v1  ;;  %2551 = vmatprep.subr.bf16.mxu1 %v2984_v57 }
 0x146   :  { %2527 = vmatpush1.bf16.msra.mxu0 %v3242_v9  ;;  %2553 = vmatpush3.bf16.msra.mxu1 %v3317_v35 }
 0x147   :  { %2529 = vmatprep.subr.bf16.mxu0 %v3251_v12  ;;  %2554 = vmatprep.subr.bf16.mxu1 %v2984_v57 }
 0x14a   :  { %2531 = vmatpush1.bf16.msra.mxu0 %v3276_v20  ;;  %2556 = vmatpush3.bf16.msra.mxu1 %v3338_v39 }
 0x14b   :  { %2533 = vmatprep.subr.bf16.mxu0 %v3285_v25  ;;  %2557 = vmatprep.subr.bf16.mxu1 %v2984_v57 }
 0x14e   :  { %2535 = vmatpush1.bf16.msra.mxu0 %v3304_v31  ;;  %2559 = vmatpush3.bf16.msra.mxu1 %v3353_v43 }
 0x14f   :  { %2561 = vmatprep.subr.bf16.mxu0 %v3071_v16  ;;  %2592 = vmatprep.subr.bf16.mxu1 %v2984_v57 }
 0x204   :  { %v605_v36 = vpop.f32.mrb[2].mxu0  ;;  %v676_v50 = vpop.f32.mrb[10].mxu1 }
 0x205   :  { %v2866_v55 = vadd.f32 %v605_v36, %v3403_v6  ;;  %v607_v15 = vpop.f32.mrb[3].mxu0  ;;  %v2130_v17 = vpop.f32.mrb[11].mxu1  ;;  %v694_v37 = vadd.f32 %v3418_v40, %v676_v50 }
 0x206   :  { %v2867_v24 = vadd.f32 %v607_v15, %v3407_v13 }
 0x207   :  { %v1847_v19 = vmul.f32 -1.442695, %v2866_v55 }
 0x208   :  { %v1848_v26 = vmul.f32 -1.442695, %v2867_v24 }
 0x209   :  { %2909 = vpow2.f32 %v1847_v19 }
 0x20a   :  { %2911 = vpow2.f32 %v1848_v26 }
 0x213   :  { %v2910_v27 = vpop.eup %2909 }
 0x214   :  { %v684_v29 = vadd.f32 1.0, %v2910_v27  ;;  %v2912_v32 = vpop.eup %2911 }
 0x215   :  { %v691_v34 = vadd.f32 1.0, %v2912_v32 }
 0x216   :  { %2913 = vrcp.f32 %v684_v29 }
 0x217   :  { %2915 = vrcp.f32 %v691_v34 }
 0x220   :  { %v2914_v38 = vpop.eup %2913 }
 0x221   :  { %v695_v42 = vmul.f32 %v2914_v38, %v694_v37  ;;  %v2916_v47 = vpop.eup %2915 }
 0x222   :  { %v698_v48 = vsub.f32 1.0, %v2916_v47  ;;  %v700_v59 = vmul.f32 %v2916_v47, %v3422_v11 }
 0x223   :  { %v696_v46 = vadd.f32 %v695_v42, %v3395_v53 }
 0x225   :  { %2917 = vtanh.f32 %v696_v46 }
 0x22f   :  { %v2918_v52 = vpop.eup %2917 }
 0x230   :  { %v699_v56 = vmul.f32 %v2918_v52, %v698_v48 }
 0x232   :  { %v701_v63 = vadd.f32 %v700_v59, %v699_v56 }
 0x234   :  { %v3470_v0 = vclamps-f32 %v701_v63, 5.0 }
 0x236   :  { %1850 = vst [vmem:[%s3789_s9 + $0x8] sm:$0xff] %v3470_v0  ;;  %771 = vmatmul.mubr.f32.vlgmr.msra.gmra.mrb[4].mxu0 %v3470_v0  ;;  %2164 = vmatmul.mubr.f32.vlgmr.msra.gmra.mrb[12].mxu1 %v3470_v0 }
 0x237   :  { %2563 = vmatpush1.bf16.msra.mxu0 %v3085_v21  ;;  %2594 = vmatpush3.bf16.msra.mxu1 %v3167_v49 }
 0x238   :  { %2565 = vmatprep.subr.bf16.mxu0 %v3088_v22  ;;  %2595 = vmatprep.subr.bf16.mxu1 %v2984_v57 }
 0x239   :  { %937 = vmatprep.mubr.f32.mxu0 %v2983_v3  ;;  %2198 = vmatprep.mubr.msk.f32.mxu1 %vm2985_vm1, %v2983_v3 }
 0x23b   :  { %2567 = vmatpush1.bf16.msra.mxu0 %v3114_v30  ;;  %2597 = vmatpush3.bf16.msra.mxu1 %v3201_v60 }
 0x23c   :  { %2569 = vmatprep.subr.bf16.mxu0 %v3120_v33  ;;  %2598 = vmatprep.subr.bf16.mxu1 %v2984_v57 }
 0x23f   :  { %2571 = vmatpush1.bf16.msra.mxu0 %v3143_v41  ;;  %2600 = vmatpush3.bf16.msra.mxu1 %v3235_v7 }
 0x240   :  { %2573 = vmatprep.subr.bf16.mxu0 %v3152_v44  ;;  %2601 = vmatprep.subr.bf16.mxu1 %v2984_v57 }
 0x243   :  { %2575 = vmatpush1.bf16.msra.mxu0 %v3174_v51  ;;  %2603 = vmatpush3.bf16.msra.mxu1 %v3269_v18 }
 0x244   :  { %2577 = vmatprep.subr.bf16.mxu0 %v3183_v54  ;;  %2604 = vmatprep.subr.bf16.mxu1 %v2984_v57 }
 0x247   :  { %2579 = vmatpush1.bf16.msra.mxu0 %v3208_v62  ;;  %2606 = vmatpush3.bf16.msra.mxu1 %v3297_v28 }
 0x248   :  { %2581 = vmatprep.subr.bf16.mxu0 %v3217_v1  ;;  %2607 = vmatprep.subr.bf16.mxu1 %v2984_v57 }
 0x24b   :  { %2583 = vmatpush1.bf16.msra.mxu0 %v3242_v9  ;;  %2609 = vmatpush3.bf16.msra.mxu1 %v3317_v35 }
 0x24c   :  { %2585 = vmatprep.subr.bf16.mxu0 %v3251_v12  ;;  %2610 = vmatprep.subr.bf16.mxu1 %v2984_v57 }
 0x24f   :  { %2587 = vmatpush1.bf16.msra.mxu0 %v3276_v20  ;;  %2612 = vmatpush3.bf16.msra.mxu1 %v3338_v39 }
 0x250   :  { %2589 = vmatprep.subr.bf16.mxu0 %v3285_v25  ;;  %2613 = vmatprep.subr.bf16.mxu1 %v2984_v57 }
 0x253   :  { %2591 = vmatpush1.bf16.msra.mxu0 %v3304_v31  ;;  %2615 = vmatpush3.bf16.msra.mxu1 %v3353_v43 }
 0x254   :  { %2617 = vmatprep.subr.bf16.mxu0 %v3071_v16  ;;  %2648 = vmatprep.subr.bf16.mxu1 %v2984_v57 }
 0x309   :  { %v772_v53 = vpop.f32.mrb[4].mxu0  ;;  %v843_v2 = vpop.f32.mrb[12].mxu1 }
 0x30a   :  { %v2868_v5 = vadd.f32 %v772_v53, %v3403_v6  ;;  %v774_v10 = vpop.f32.mrb[5].mxu0  ;;  %v2165_v11 = vpop.f32.mrb[13].mxu1  ;;  %v861_v26 = vadd.f32 %v3418_v40, %v843_v2 }
 0x30b   :  { %v2869_v50 = vadd.f32 %v774_v10, %v3407_v13 }
 0x30c   :  { %v1851_v36 = vmul.f32 -1.442695, %v2868_v5 }
 0x30d   :  { %v1852_v55 = vmul.f32 -1.442695, %v2869_v50 }
 0x30e   :  { %2919 = vpow2.f32 %v1851_v36 }
 0x30f   :  { %2921 = vpow2.f32 %v1852_v55 }
 0x318   :  { %v2920_v15 = vpop.eup %2919 }
 0x319   :  { %v851_v17 = vadd.f32 1.0, %v2920_v15  ;;  %v2922_v19 = vpop.eup %2921 }
 0x31a   :  { %v858_v24 = vadd.f32 1.0, %v2922_v19 }
 0x31b   :  { %2923 = vrcp.f32 %v851_v17 }
 0x31c   :  { %2925 = vrcp.f32 %v858_v24 }
 0x325   :  { %v2924_v27 = vpop.eup %2923 }
 0x326   :  { %v862_v29 = vmul.f32 %v2924_v27, %v861_v26  ;;  %v2926_v34 = vpop.eup %2925 }
 0x327   :  { %v865_v37 = vsub.f32 1.0, %v2926_v34  ;;  %v867_v46 = vmul.f32 %v2926_v34, %v3470_v0 }
 0x328   :  { %v863_v32 = vadd.f32 %v862_v29, %v3399_v61 }
 0x32a   :  { %2927 = vtanh.f32 %v863_v32 }
 0x334   :  { %v2928_v38 = vpop.eup %2927 }
 0x335   :  { %v866_v42 = vmul.f32 %v2928_v38, %v865_v37 }
 0x337   :  { %v868_v47 = vadd.f32 %v867_v46, %v866_v42 }
 0x339   :  { %v3518_v48 = vclamps-f32 %v868_v47, 5.0 }
 0x33b   :  { %1854 = vst [vmem:[%s3789_s9 + $0x10] sm:$0xff] %v3518_v48  ;;  %938 = vmatmul.mubr.f32.vlgmr.msra.gmra.mrb[6].mxu0 %v3518_v48  ;;  %2199 = vmatmul.mubr.f32.vlgmr.msra.gmra.mrb[14].mxu1 %v3518_v48 }
 0x33c   :  { %2619 = vmatpush1.bf16.msra.mxu0 %v3085_v21  ;;  %2650 = vmatpush3.bf16.msra.mxu1 %v3167_v49 }
 0x33d   :  { %2621 = vmatprep.subr.bf16.mxu0 %v3088_v22  ;;  %2651 = vmatprep.subr.bf16.mxu1 %v2984_v57 }
 0x33e   :  { %1104 = vmatprep.mubr.f32.mxu0 %v2983_v3  ;;  %2233 = vmatprep.mubr.msk.f32.mxu1 %vm2985_vm1, %v2983_v3 }
 0x340   :  { %2623 = vmatpush1.bf16.msra.mxu0 %v3114_v30  ;;  %2653 = vmatpush3.bf16.msra.mxu1 %v3201_v60 }
 0x341   :  { %2625 = vmatprep.subr.bf16.mxu0 %v3120_v33  ;;  %2654 = vmatprep.subr.bf16.mxu1 %v2984_v57 }
 0x344   :  { %2627 = vmatpush1.bf16.msra.mxu0 %v3143_v41  ;;  %2656 = vmatpush3.bf16.msra.mxu1 %v3235_v7 }
 0x345   :  { %2629 = vmatprep.subr.bf16.mxu0 %v3152_v44  ;;  %2657 = vmatprep.subr.bf16.mxu1 %v2984_v57 }
 0x348   :  { %2631 = vmatpush1.bf16.msra.mxu0 %v3174_v51  ;;  %2659 = vmatpush3.bf16.msra.mxu1 %v3269_v18 }
 0x349   :  { %2633 = vmatprep.subr.bf16.mxu0 %v3183_v54  ;;  %2660 = vmatprep.subr.bf16.mxu1 %v2984_v57 }
 0x34c   :  { %2635 = vmatpush1.bf16.msra.mxu0 %v3208_v62  ;;  %2662 = vmatpush3.bf16.msra.mxu1 %v3297_v28 }
 0x34d   :  { %2637 = vmatprep.subr.bf16.mxu0 %v3217_v1  ;;  %2663 = vmatprep.subr.bf16.mxu1 %v2984_v57 }
 0x350   :  { %2639 = vmatpush1.bf16.msra.mxu0 %v3242_v9  ;;  %2665 = vmatpush3.bf16.msra.mxu1 %v3317_v35 }
 0x351   :  { %2641 = vmatprep.subr.bf16.mxu0 %v3251_v12  ;;  %2666 = vmatprep.subr.bf16.mxu1 %v2984_v57 }
 0x354   :  { %2643 = vmatpush1.bf16.msra.mxu0 %v3276_v20  ;;  %2668 = vmatpush3.bf16.msra.mxu1 %v3338_v39 }
 0x355   :  { %2645 = vmatprep.subr.bf16.mxu0 %v3285_v25  ;;  %2669 = vmatprep.subr.bf16.mxu1 %v2984_v57 }
 0x358   :  { %2647 = vmatpush1.bf16.msra.mxu0 %v3304_v31  ;;  %2671 = vmatpush3.bf16.msra.mxu1 %v3353_v43 }
 0x359   :  { %2673 = vmatprep.subr.bf16.mxu0 %v3071_v16  ;;  %2704 = vmatprep.subr.bf16.mxu1 %v2984_v57 }
 0x40e   :  { %v939_v61 = vpop.f32.mrb[6].mxu0  ;;  %v1010_v52 = vpop.f32.mrb[14].mxu1 }
 0x40f   :  { %v2870_v56 = vadd.f32 %v939_v61, %v3403_v6  ;;  %v941_v59 = vpop.f32.mrb[7].mxu0  ;;  %v2200_v63 = vpop.f32.mrb[15].mxu1  ;;  %v1028_v50 = vadd.f32 %v3418_v40, %v1010_v52 }
 0x410   :  { %v2871_v53 = vadd.f32 %v941_v59, %v3407_v13 }
 0x411   :  { %v1855_v0 = vmul.f32 -1.442695, %v2870_v56 }
 0x412   :  { %v1856_v2 = vmul.f32 -1.442695, %v2871_v53 }
 0x413   :  { %2929 = vpow2.f32 %v1855_v0 }
 0x414   :  { %2931 = vpow2.f32 %v1856_v2 }
 0x41d   :  { %v2930_v5 = vpop.eup %2929 }
 0x41e   :  { %v1018_v10 = vadd.f32 1.0, %v2930_v5  ;;  %v2932_v11 = vpop.eup %2931 }
 0x41f   :  { %v1025_v36 = vadd.f32 1.0, %v2932_v11 }
 0x420   :  { %2933 = vrcp.f32 %v1018_v10 }
 0x421   :  { %2935 = vrcp.f32 %v1025_v36 }
 0x42a   :  { %v2934_v55 = vpop.eup %2933 }
 0x42b   :  { %v1029_v15 = vmul.f32 %v2934_v55, %v1028_v50  ;;  %v2936_v19 = vpop.eup %2935 }
 0x42c   :  { %v1032_v24 = vsub.f32 1.0, %v2936_v19  ;;  %v1034_v29 = vmul.f32 %v2936_v19, %v3518_v48 }
 0x42d   :  { %v1030_v17 = vadd.f32 %v1029_v15, %v3397_v58 }
 0x42f   :  { %2937 = vtanh.f32 %v1030_v17 }
 0x439   :  { %v2938_v26 = vpop.eup %2937 }
 0x43a   :  { %v1033_v27 = vmul.f32 %v2938_v26, %v1032_v24 }
 0x43c   :  { %v1035_v32 = vadd.f32 %v1034_v29, %v1033_v27 }
 0x43e   :  { %v3566_v34 = vclamps-f32 %v1035_v32, 5.0 }
 0x440   :  { %1858 = vst [vmem:[%s3789_s9 + $0x18] sm:$0xff] %v3566_v34  ;;  %1105 = vmatmul.mubr.f32.vlgmr.msra.gmra.mrb[8].mxu0 %v3566_v34  ;;  %2234 = vmatmul.mubr.f32.vlgmr.msra.gmra.mrb[16].mxu1 %v3566_v34 }
 0x441   :  { %2675 = vmatpush1.bf16.msra.mxu0 %v3085_v21  ;;  %2706 = vmatpush3.bf16.msra.mxu1 %v3167_v49 }
 0x442   :  { %2677 = vmatprep.subr.bf16.mxu0 %v3088_v22  ;;  %2707 = vmatprep.subr.bf16.mxu1 %v2984_v57 }
 0x443   :  { %1271 = vmatprep.mubr.f32.mxu0 %v2983_v3  ;;  %2268 = vmatprep.mubr.msk.f32.mxu1 %vm2985_vm1, %v2983_v3 }
 0x445   :  { %2679 = vmatpush1.bf16.msra.mxu0 %v3114_v30  ;;  %2709 = vmatpush3.bf16.msra.mxu1 %v3201_v60 }
 0x446   :  { %2681 = vmatprep.subr.bf16.mxu0 %v3120_v33  ;;  %2710 = vmatprep.subr.bf16.mxu1 %v2984_v57 }
 0x449   :  { %2683 = vmatpush1.bf16.msra.mxu0 %v3143_v41  ;;  %2712 = vmatpush3.bf16.msra.mxu1 %v3235_v7 }
 0x44a   :  { %2685 = vmatprep.subr.bf16.mxu0 %v3152_v44  ;;  %2713 = vmatprep.subr.bf16.mxu1 %v2984_v57 }
 0x44d   :  { %2687 = vmatpush1.bf16.msra.mxu0 %v3174_v51  ;;  %2715 = vmatpush3.bf16.msra.mxu1 %v3269_v18 }
 0x44e   :  { %2689 = vmatprep.subr.bf16.mxu0 %v3183_v54  ;;  %2716 = vmatprep.subr.bf16.mxu1 %v2984_v57 }
 0x451   :  { %2691 = vmatpush1.bf16.msra.mxu0 %v3208_v62  ;;  %2718 = vmatpush3.bf16.msra.mxu1 %v3297_v28 }
 0x452   :  { %2693 = vmatprep.subr.bf16.mxu0 %v3217_v1  ;;  %2719 = vmatprep.subr.bf16.mxu1 %v2984_v57 }
 0x455   :  { %2695 = vmatpush1.bf16.msra.mxu0 %v3242_v9  ;;  %2721 = vmatpush3.bf16.msra.mxu1 %v3317_v35 }
 0x456   :  { %2697 = vmatprep.subr.bf16.mxu0 %v3251_v12  ;;  %2722 = vmatprep.subr.bf16.mxu1 %v2984_v57 }
 0x459   :  { %2699 = vmatpush1.bf16.msra.mxu0 %v3276_v20  ;;  %2724 = vmatpush3.bf16.msra.mxu1 %v3338_v39 }
 0x45a   :  { %2701 = vmatprep.subr.bf16.mxu0 %v3285_v25  ;;  %2725 = vmatprep.subr.bf16.mxu1 %v2984_v57 }
 0x45d   :  { %2703 = vmatpush1.bf16.msra.mxu0 %v3304_v31  ;;  %2727 = vmatpush3.bf16.msra.mxu1 %v3353_v43 }
 0x45e   :  { %2729 = vmatprep.subr.bf16.mxu0 %v3071_v16  ;;  %2760 = vmatprep.subr.bf16.mxu1 %v2984_v57 }
 0x513   :  { %v1106_v58 = vpop.f32.mrb[8].mxu0  ;;  %v1177_v37 = vpop.f32.mrb[16].mxu1 }
 0x514   :  { %v2872_v38 = vadd.f32 %v1106_v58, %v3403_v6  ;;  %v1108_v42 = vpop.f32.mrb[9].mxu0  ;;  %v2235_v46 = vpop.f32.mrb[17].mxu1  ;;  %v1195_v0 = vadd.f32 %v3418_v40, %v1177_v37 }
 0x515   :  { %v2873_v48 = vadd.f32 %v1108_v42, %v3407_v13 }
 0x516   :  { %v1859_v47 = vmul.f32 -1.442695, %v2872_v38 }
 0x517   :  { %v1860_v61 = vmul.f32 -1.442695, %v2873_v48 }
 0x518   :  { %2939 = vpow2.f32 %v1859_v47 }
 0x519   :  { %2941 = vpow2.f32 %v1860_v61 }
 0x522   :  { %v2940_v52 = vpop.eup %2939 }
 0x523   :  { %v1185_v56 = vadd.f32 1.0, %v2940_v52  ;;  %v2942_v59 = vpop.eup %2941 }
 0x524   :  { %v1192_v63 = vadd.f32 1.0, %v2942_v59 }
 0x525   :  { %2943 = vrcp.f32 %v1185_v56 }
 0x526   :  { %2945 = vrcp.f32 %v1192_v63 }
 0x52f   :  { %v2944_v53 = vpop.eup %2943 }
 0x530   :  { %v1196_v2 = vmul.f32 %v2944_v53, %v1195_v0  ;;  %v2946_v10 = vpop.eup %2945 }
 0x531   :  { %v1199_v11 = vsub.f32 1.0, %v2946_v10  ;;  %v1201_v55 = vmul.f32 %v2946_v10, %v3566_v34 }
 0x532   :  { %v1197_v5 = vadd.f32 %v1196_v2, %v3405_v8 }
 0x534   :  { %2947 = vtanh.f32 %v1197_v5  ;;  %v1710_v5 = vld [vmem:[%s3790_s6 + $0x10] sm:$0xff] }
 0x53e   :  { %v2948_v36 = vpop.eup %2947 }
 0x53f   :  { %v1200_v50 = vmul.f32 %v2948_v36, %v1199_v11  ;;  %v1712_v11 = vld [vmem:[%s3790_s6 + $0x20] sm:$0xff]  ;;  %v1713_v36 = vld [vmem:[%s3790_s6 + $0x28] sm:$0xff] }
 0x541   :  { %v1202_v15 = vadd.f32 %v1201_v55, %v1200_v50  ;;  %v2847_v50 = vpack.c.bf16 %v1713_v36, %v1712_v11  ;;  %v1714_v55 = vld [vmem:[%s3790_s6 + $0x30] sm:$0xff] }
 0x543   :  { %v3614_v17 = vclamps-f32 %v1202_v15, 5.0  ;;  %v1715_v15 = vld [vmem:[%s3790_s6 + $0x38] sm:$0xff] }
 0x545   :  { %1862 = vst [vmem:[%s3789_s9 + $0x20] sm:$0xff] %v3614_v17  ;;  %1272 = vmatmul.mubr.f32.vlgmr.msra.gmra.mrb[10].mxu0 %v3614_v17  ;;  %2269 = vmatmul.mubr.f32.vlgmr.msra.gmra.mrb[18].mxu1 %v3614_v17 }
 0x546   :  { %2731 = vmatpush1.bf16.msra.mxu0 %v3085_v21  ;;  %2762 = vmatpush3.bf16.msra.mxu1 %v3167_v49 }
 0x547   :  { %2733 = vmatprep.subr.bf16.mxu0 %v3088_v22  ;;  %2763 = vmatprep.subr.bf16.mxu1 %v2984_v57 }
 0x548   :  { %1438 = vmatprep.mubr.f32.mxu0 %v2983_v3  ;;  %2303 = vmatprep.mubr.msk.f32.mxu1 %vm2985_vm1, %v2983_v3 }
 0x54a   :  { %2735 = vmatpush1.bf16.msra.mxu0 %v3114_v30  ;;  %2765 = vmatpush3.bf16.msra.mxu1 %v3201_v60 }
 0x54b   :  { %2737 = vmatprep.subr.bf16.mxu0 %v3120_v33  ;;  %2766 = vmatprep.subr.bf16.mxu1 %v2984_v57 }
 0x54e   :  { %2739 = vmatpush1.bf16.msra.mxu0 %v3143_v41  ;;  %2768 = vmatpush3.bf16.msra.mxu1 %v3235_v7 }
 0x54f   :  { %2741 = vmatprep.subr.bf16.mxu0 %v3152_v44  ;;  %2769 = vmatprep.subr.bf16.mxu1 %v2984_v57 }
 0x552   :  { %2743 = vmatpush1.bf16.msra.mxu0 %v3174_v51  ;;  %2771 = vmatpush3.bf16.msra.mxu1 %v3269_v18 }
 0x553   :  { %2745 = vmatprep.subr.bf16.mxu0 %v3183_v54  ;;  %2772 = vmatprep.subr.bf16.mxu1 %v2984_v57 }
 0x556   :  { %2747 = vmatpush1.bf16.msra.mxu0 %v3208_v62  ;;  %2774 = vmatpush3.bf16.msra.mxu1 %v3297_v28 }
 0x557   :  { %2749 = vmatprep.subr.bf16.mxu0 %v3217_v1  ;;  %2775 = vmatprep.subr.bf16.mxu1 %v2984_v57 }
 0x55a   :  { %2751 = vmatpush1.bf16.msra.mxu0 %v3242_v9  ;;  %2777 = vmatpush3.bf16.msra.mxu1 %v3317_v35 }
 0x55b   :  { %2753 = vmatprep.subr.bf16.mxu0 %v3251_v12  ;;  %2778 = vmatprep.subr.bf16.mxu1 %v2984_v57 }
 0x55e   :  { %2755 = vmatpush1.bf16.msra.mxu0 %v3276_v20  ;;  %2780 = vmatpush3.bf16.msra.mxu1 %v3338_v39 }
 0x55f   :  { %2757 = vmatprep.subr.bf16.mxu0 %v3285_v25  ;;  %2781 = vmatprep.subr.bf16.mxu1 %v2984_v57 }
 0x562   :  { %2759 = vmatpush1.bf16.msra.mxu0 %v3304_v31  ;;  %2783 = vmatpush3.bf16.msra.mxu1 %v3353_v43 }
 0x563   :  { %2785 = vmatprep.subr.bf16.mxu0 %v3071_v16  ;;  %2816 = vmatprep.subr.bf16.mxu1 %v2984_v57 }
 0x618   :  { %v1273_v8 = vpop.f32.mrb[10].mxu0  ;;  %v1344_v19 = vpop.f32.mrb[18].mxu1 }
 0x619   :  { %v2874_v24 = vadd.f32 %v1273_v8, %v3403_v6  ;;  %v1275_v26 = vpop.f32.mrb[11].mxu0  ;;  %v2270_v27 = vpop.f32.mrb[19].mxu1  ;;  %v1362_v16 = vadd.f32 %v3418_v40, %v1344_v19  ;;  %v1716_v8 = vld [vmem:[%s3790_s6 + $0x40] sm:$0xff]  ;;  %v1717_v19 = vld [vmem:[%s3790_s6 + $0x48] sm:$0xff] }
 0x61a   :  { %v2875_v32 = vadd.f32 %v1275_v26, %v3407_v13  ;;  %v1718_v26 = vld [vmem:[%s3790_s6 + $0x50] sm:$0xff]  ;;  %v1719_v27 = vld [vmem:[%s3790_s6 + $0x58] sm:$0xff] }
 0x61b   :  { %v1863_v29 = vmul.f32 -1.442695, %v2874_v24  ;;  %v2853_v24 = vpack.c.bf16 %v1717_v19, %v1716_v8 }
 0x61c   :  { %v1864_v34 = vmul.f32 -1.442695, %v2875_v32  ;;  %v1720_v32 = vld [vmem:[%s3790_s6 + $0x60] sm:$0xff] }
 0x61d   :  { %2949 = vpow2.f32 %v1863_v29  ;;  %v2856_v29 = vpack.c.bf16 %v1719_v27, %v1718_v26 }
 0x61e   :  { %2951 = vpow2.f32 %v1864_v34  ;;  %v1721_v34 = vld [vmem:[%s3790_s6 + $0x68] sm:$0xff] }
 0x627   :  { %v2950_v58 = vpop.eup %2949 }
 0x628   :  { %v1352_v37 = vadd.f32 1.0, %v2950_v58  ;;  %v2952_v38 = vpop.eup %2951  ;;  %v2859_v58 = vpack.c.bf16 %v1721_v34, %v1720_v32 }
 0x629   :  { %v1359_v42 = vadd.f32 1.0, %v2952_v38  ;;  %v1723_v38 = vld [vmem:[%s3790_s6 + $0x78] sm:$0xff] }
 0x62a   :  { %2953 = vrcp.f32 %v1352_v37  ;;  %v1722_v37 = vld [vmem:[%s3790_s6 + $0x70] sm:$0xff] }
 0x62b   :  { %2955 = vrcp.f32 %v1359_v42  ;;  %v2862_v42 = vpack.c.bf16 %v1723_v38, %v1722_v37 }
 0x634   :  { %v2954_v46 = vpop.eup %2953 }
 0x635   :  { %v1363_v47 = vmul.f32 %v2954_v46, %v1362_v16  ;;  %v2956_v61 = vpop.eup %2955 }
 0x636   :  { %v1366_v52 = vsub.f32 1.0, %v2956_v61  ;;  %v1368_v63 = vmul.f32 %v2956_v61, %v3614_v17  ;;  %v2850_v17 = vpack.c.bf16 %v1715_v15, %v1714_v55 }
 0x637   :  { %v1364_v48 = vadd.f32 %v1363_v47, %v3401_v4  ;;  %v1708_v4 = vld [vmem:[%s3790_s6] sm:$0xff] }
 0x639   :  { %2957 = vtanh.f32 %v1364_v48 }
 0x643   :  { %v2958_v56 = vpop.eup %2957 }
 0x644   :  { %v1367_v59 = vmul.f32 %v2958_v56, %v1366_v52 }
 0x646   :  { %v1369_v0 = vadd.f32 %v1368_v63, %v1367_v59 }
 0x648   :  { %v1865_v53 = vclamps-f32 %v1369_v0, 5.0 }
 0x64a   :  { %1866 = vst [vmem:[%s3789_s9 + $0x28] sm:$0xff] %v1865_v53  ;;  %1439 = vmatmul.mubr.f32.vlgmr.msra.gmra.mrb[12].mxu0 %v1865_v53  ;;  %2304 = vmatmul.mubr.f32.vlgmr.msra.gmra.mrb[20].mxu1 %v1865_v53 }
 0x64b   :  { %2787 = vmatpush1.bf16.msra.mxu0 %v3085_v21  ;;  %2818 = vmatpush3.bf16.msra.mxu1 %v3167_v49 }
 0x64c   :  { %2789 = vmatprep.subr.bf16.mxu0 %v3088_v22  ;;  %2819 = vmatprep.subr.bf16.mxu1 %v2984_v57 }
 0x64d   :  { %1605 = vmatprep.mubr.f32.mxu0 %v2983_v3  ;;  %2338 = vmatprep.mubr.msk.f32.mxu1 %vm2985_vm1, %v2983_v3 }
 0x64f   :  { %2791 = vmatpush1.bf16.msra.mxu0 %v3114_v30  ;;  %2821 = vmatpush3.bf16.msra.mxu1 %v3201_v60 }
 0x650   :  { %2793 = vmatprep.subr.bf16.mxu0 %v3120_v33  ;;  %2822 = vmatprep.subr.bf16.mxu1 %v2984_v57 }
 0x653   :  { %2795 = vmatpush1.bf16.msra.mxu0 %v3143_v41  ;;  %2824 = vmatpush3.bf16.msra.mxu1 %v3235_v7 }
 0x654   :  { %2797 = vmatprep.subr.bf16.mxu0 %v3152_v44  ;;  %2825 = vmatprep.subr.bf16.mxu1 %v2984_v57 }
 0x657   :  { %2799 = vmatpush1.bf16.msra.mxu0 %v3174_v51  ;;  %2827 = vmatpush3.bf16.msra.mxu1 %v3269_v18 }
 0x658   :  { %2801 = vmatprep.subr.bf16.mxu0 %v3183_v54  ;;  %2828 = vmatprep.subr.bf16.mxu1 %v2984_v57 }
 0x65b   :  { %2803 = vmatpush1.bf16.msra.mxu0 %v3208_v62  ;;  %2830 = vmatpush3.bf16.msra.mxu1 %v3297_v28 }
 0x65c   :  { %2805 = vmatprep.subr.bf16.mxu0 %v3217_v1  ;;  %2831 = vmatprep.subr.bf16.mxu1 %v2984_v57 }
 0x65f   :  { %2807 = vmatpush1.bf16.msra.mxu0 %v3242_v9  ;;  %2833 = vmatpush3.bf16.msra.mxu1 %v3317_v35 }
 0x660   :  { %2809 = vmatprep.subr.bf16.mxu0 %v3251_v12  ;;  %2834 = vmatprep.subr.bf16.mxu1 %v2984_v57 }
 0x663   :  { %2811 = vmatpush1.bf16.msra.mxu0 %v3276_v20  ;;  %2836 = vmatpush3.bf16.msra.mxu1 %v3338_v39 }
 0x664   :  { %2813 = vmatprep.subr.bf16.mxu0 %v3285_v25  ;;  %2837 = vmatprep.subr.bf16.mxu1 %v2984_v57 }
 0x667   :  { %2815 = vmatpush1.bf16.msra.mxu0 %v3304_v31  ;;  %2839 = vmatpush3.bf16.msra.mxu1 %v3353_v43 }
 0x668   :  { %2840 = vmatprep.subr.bf16.mxu0 %v2984_v57 }
 0x71d   :  { %v1440_v21 = vpop.f32.mrb[12].mxu0  ;;  %v1511_v22 = vpop.f32.mrb[20].mxu1 }
 0x71e   :  { %v2876_v30 = vadd.f32 %v1440_v21, %v3403_v6  ;;  %v1442_v33 = vpop.f32.mrb[13].mxu0  ;;  %v2305_v41 = vpop.f32.mrb[21].mxu1  ;;  %v1529_v7 = vadd.f32 %v3418_v40, %v1511_v22 }
 0x71f   :  { %v2877_v49 = vadd.f32 %v1442_v33, %v3407_v13 }
 0x720   :  { %v1867_v44 = vmul.f32 -1.442695, %v2876_v30 }
 0x721   :  { %v1868_v51 = vmul.f32 -1.442695, %v2877_v49 }
 0x722   :  { %2959 = vpow2.f32 %v1867_v44 }
 0x723   :  { %2961 = vpow2.f32 %v1868_v51 }
 0x72c   :  { %v2960_v54 = vpop.eup %2959 }
 0x72d   :  { %v1519_v60 = vadd.f32 1.0, %v2960_v54  ;;  %v2962_v62 = vpop.eup %2961 }
 0x72e   :  { %v1526_v1 = vadd.f32 1.0, %v2962_v62 }
 0x72f   :  { %2963 = vrcp.f32 %v1519_v60 }
 0x730   :  { %2965 = vrcp.f32 %v1526_v1 }
 0x739   :  { %v2964_v9 = vpop.eup %2963 }
 0x73a   :  { %v1530_v12 = vmul.f32 %v2964_v9, %v1529_v7  ;;  %v2966_v20 = vpop.eup %2965 }
 0x73b   :  { %v1533_v25 = vsub.f32 1.0, %v2966_v20  ;;  %v1535_v35 = vmul.f32 %v2966_v20, %v1865_v53 }
 0x73c   :  { %v1531_v18 = vadd.f32 %v1530_v12, %v3412_v23  ;;  %v1709_v23 = vld [vmem:[%s3790_s6 + $0x8] sm:$0xff]  ;;  %v1802_v12 = vand.u32 127, %v53_v45 }
 0x73d   :  { %v2841_v2 = vpack.c.bf16 %v1709_v23, %v1708_v4 }
 0x73e   :  { %2967 = vtanh.f32 %v1531_v18  ;;  %vm1803_vm2 = vcmp.ge.s32.totalorder %v1802_v12, 32  ;;  %vm1804_vm3 = vcmp.lt.s32.totalorder %v1802_v12, 64 }
 0x73f   :  { %vm1805_vm4 = vmand %vm1803_vm2, %vm1804_vm3 }
 0x748   :  { %v2968_v28 = vpop.eup %2967 }
 0x749   :  { %v1534_v31 = vmul.f32 %v2968_v28, %v1533_v25 }
 0x74b   :  { %v1536_v39 = vadd.f32 %v1535_v35, %v1534_v31 }
 0x74d   :  { %v3703_v43 = vclamps-f32 %v1536_v39, 5.0 }
 0x74f   :  { %1870 = vst [vmem:[%s3789_s9 + $0x30] sm:$0xff] %v3703_v43  ;;  %1606 = vmatmul.mubr.f32.vlgmr.msra.gmra.mrb[14].mxu0 %v3703_v43  ;;  %2339 = vmatmul.mubr.f32.vlgmr.msra.gmra.mrb[22].mxu1 %v3703_v43 }
 0x750   :  { %2373 = vmatprep.mubr.msk.f32.mxu0 %vm2985_vm1, %v2983_v3  ;;  %2842 = vmatpush3.bf16.msra.mxu0 %v2841_v2  ;;  %v1711_v3 = vld [vmem:[%s3790_s6 + $0x18] sm:$0xff] }
 0x751   :  { %2843 = vmatprep.subr.bf16.mxu0 %v2984_v57  ;;  %v2844_v10 = vpack.c.bf16 %v1711_v3, %v1710_v5 }
 0x754   :  { %2845 = vmatpush3.bf16.msra.mxu0 %v2844_v10 }
 0x755   :  { %2846 = vmatprep.subr.bf16.mxu0 %v2984_v57 }
 0x758   :  { %2848 = vmatpush3.bf16.msra.mxu0 %v2847_v50 }
 0x759   :  { %2849 = vmatprep.subr.bf16.mxu0 %v2984_v57 }
 0x75c   :  { %2851 = vmatpush3.bf16.msra.mxu0 %v2850_v17 }
 0x75d   :  { %2852 = vmatprep.subr.bf16.mxu0 %v2984_v57 }
 0x760   :  { %2854 = vmatpush3.bf16.msra.mxu0 %v2853_v24 }
 0x761   :  { %2855 = vmatprep.subr.bf16.mxu0 %v2984_v57 }
 0x764   :  { %2857 = vmatpush3.bf16.msra.mxu0 %v2856_v29 }
 0x765   :  { %2858 = vmatprep.subr.bf16.mxu0 %v2984_v57 }
 0x768   :  { %2860 = vmatpush3.bf16.msra.mxu0 %v2859_v58 }
 0x769   :  { %2861 = vmatprep.subr.bf16.mxu0 %v2984_v57 }
 0x76c   :  { %2863 = vmatpush3.bf16.msra.mxu0 %v2862_v42 }
 0x822   :  { %v1607_v16 = vpop.f32.mrb[14].mxu0  ;;  %v1678_v46 = vpop.f32.mrb[22].mxu1 }
 0x823   :  { %v2878_v47 = vadd.f32 %v1607_v16, %v3403_v6  ;;  %v1609_v48 = vpop.f32.mrb[15].mxu0  ;;  %v2340_v61 = vpop.f32.mrb[23].mxu1  ;;  %v1696_v57 = vadd.f32 %v3418_v40, %v1678_v46  ;;  %v1875_v40 = vld [vmem:[%s3791_s7] ss:$0 sm:$0xff] }
 0x824   :  { %v2879_v56 = vadd.f32 %v1609_v48, %v3407_v13 }
 0x825   :  { %v1871_v52 = vmul.f32 -1.442695, %v2878_v47 }
 0x826   :  { %v1872_v59 = vmul.f32 -1.442695, %v2879_v56 }
 0x827   :  { %2969 = vpow2.f32 %v1871_v52 }
 0x828   :  { %2971 = vpow2.f32 %v1872_v59 }
 0x831   :  { %v2970_v63 = vpop.eup %2969 }
 0x832   :  { %v1686_v0 = vadd.f32 1.0, %v2970_v63  ;;  %v2972_v53 = vpop.eup %2971 }
 0x833   :  { %v1693_v21 = vadd.f32 1.0, %v2972_v53 }
 0x834   :  { %2973 = vrcp.f32 %v1686_v0 }
 0x835   :  { %2975 = vrcp.f32 %v1693_v21 }
 0x83e   :  { %v2974_v22 = vpop.eup %2973 }
 0x83f   :  { %v1697_v30 = vmul.f32 %v2974_v22, %v1696_v57  ;;  %v2976_v33 = vpop.eup %2975 }
 0x840   :  { %v1700_v41 = vsub.f32 1.0, %v2976_v33  ;;  %v1702_v49 = vmul.f32 %v2976_v33, %v3703_v43 }
 0x841   :  { %v1698_v6 = vadd.f32 %v1697_v30, %v3409_v14 }
 0x843   :  { %2977 = vtanh.f32 %v1698_v6 }
 0x84d   :  { %v2978_v44 = vpop.eup %2977 }
 0x84e   :  { %v1701_v13 = vmul.f32 %v2978_v44, %v1700_v41 }
 0x850   :  { %v1703_v51 = vadd.f32 %v1702_v49, %v1701_v13 }
 0x852   :  { %v1873_v54 = vclamps-f32 %v1703_v51, 5.0 }
 0x854   :  { %1874 = vst [vmem:[%s3789_s9 + $0x38] sm:$0xff] %v1873_v54  ;;  %2374 = vmatmul.mubr.f32.vlgmr.msra.gmra.mrb[16].mxu0 %v1873_v54 }
 0x927   :  { %v1797_v60 = vpop.f32.mrb[16].mxu0 }
 0x928   :  { %v1798_v14 = vadd.f32 %v1875_v40, %v1797_v60  ;;  %v2375_v62 = vpop.f32.mrb[17].mxu0 }
 0x92a   :  { %v1806_v1 = vmul.f32 1.442695, %v1798_v14 }
 0x92c   :  { %2979 = vpow2.f32 %v1806_v1 }
 0x936   :  { %v2980_v7 = vpop.eup %2979 }
 0x937   :  { %v1808_v9 = vadd.f32 0.0001, %v2980_v7 }
 0x939   :  { %2981 = vrsqrt.f32 %v1808_v9  ;;  %vm1811_vm5 = vcmp.eq.f32.partialorder %v1808_v9, inf  ;;  %v1814_v25 = vand.u32 2147483648, %v1808_v9  ;;  %vm1813_vm6 = vcmp.eq.f32.partialorder %v1808_v9, 0.0 }
 0x943   :  { %v2982_v18 = vpop.eup %2981 }
 0x944   :  { %v1810_v20 = vmul.f32 %v2982_v18, %v1808_v9 }
 0x946   :  { %v1812_v28 = vsel %vm1811_vm5, %v1808_v9, %v1810_v20 }
 0x947   :  { %v1815_v31 = vsel %vm1813_vm6, %v1814_v25, %v1812_v28 }
 0x948   :  { %v1816_v35 = vsel %vm1805_vm4, %v1815_v31, %v1798_v14 }
 0x949   :  { %1817 = vst [vmem:[%s3792_s8] sm:$0xff] %v1816_v35 }

</bundles_post_ra>
